<compile_context>
chip_gen: v6e
topology: v6e:2x2x1
jax: 0.10.0
libtpu: 0.0.40
codegen_flags: <defaults>
</compile_context>

<pallas_src>
import numpy as np
import jax
import jax.numpy as jnp
from jax.experimental import pallas as pl
from jax.experimental.pallas import tpu as pltpu

# ----------------------------- small config (Wav2vec_UConfig, shrunk) ------------------
INPUT_DIM = 32          # cfg.input_dim
VOCAB = 16              # len(target_dict) == generator output dim == discriminator input dim
GEN_KERNEL = 4          # cfg.generator_kernel
DISC_KERNEL = 6         # cfg.discriminator_kernel (causal)
DISC_DIM = 64           # cfg.discriminator_dim (shrunk from 384)
PAD_IDX = 1             # target_dict.pad()
SMOOTHNESS_WEIGHT = 0.5
CODE_PENALTY = 4.0
MAX_TEMP = 2.0          # curr_temp at update_num=0
LANES = 128             # lane-padded vocab / hidden width carried through the kernel


# ----------------------------- exact GELU (nn.GELU, approximate='none') ----------------
def _erf(x):
    # Abramowitz & Stegun 7.1.26, |err| < 1.5e-7; lowers cleanly in Mosaic.
    a1, a2, a3, a4, a5 = 0.254829592, -0.284496736, 1.421413741, -1.453152027, 1.061405429
    p = 0.3275911
    ax = jnp.abs(x)
    t = 1.0 / (1.0 + p * ax)
    poly = ((((a5 * t + a4) * t + a3) * t + a2) * t + a1) * t
    y = 1.0 - poly * jnp.exp(-ax * ax)
    return jnp.where(x >= 0, y, -y)


def _gelu_exact(x):
    return 0.5 * x * (1.0 + _erf(x * 0.7071067811865476))


# ----------------------------- fused per-sample forward kernel -------------------------
def _wav2vec_u_kernel(lens_ref, feat_ref, genw_ref, dw1_ref, dw2_ref, dw3_ref, bias_ref,
                      stats_ref):
    # lens_ref : (B,) int32 in SMEM (scalar prefetch) — kept frame count per sample
    # feat_ref : (1, T, D) f32 features of the current sample
    # genw_ref : (KG*D, 128)  bf16 generator conv weight, vocab lane-padded to 128
    # dw1_ref  : (KD*128, 128) bf16 flattened disc conv1 weight (V->H, both lane-padded)
    # dw2_ref  : (KD*128, 128) bf16 flattened disc conv2 weight (H->H)
    # dw3_ref  : (8, 128) f32 disc conv3 taps (H->1), rows >= KD zero
    # bias_ref : (8, 128) f32 biases: row0=b1, row1=b2, row2[0]=b3
    # stats_ref: (1, 8, 128) f32 per-sample stats slab
    f32, bf16 = jnp.float32, jnp.bfloat16
    T, D = feat_ref.shape[1], feat_ref.shape[2]
    KG, PG, KD = GEN_KERNEL, GEN_KERNEL // 2, DISC_KERNEL
    Tp = T + 2 * PG - KG + 1
    V, LN = VOCAB, LANES
    NEG = jnp.float32(-1e30)

    b = pl.program_id(0)
    len_b = lens_ref[b]                                             # int32 scalar (SMEM)

    # ---------- generator conv1d (k=KG, pad=KG//2, stride 1, no bias) ------------------
    x = feat_ref[0]                                                 # (T, D)
    zpad_g = jnp.zeros((PG, D), f32)
    xpad = jnp.concatenate([zpad_g, x, zpad_g], axis=0)             # (T + 2*PG, D)
    im2col_g = jnp.concatenate([xpad[k:k + Tp, :] for k in range(KG)], axis=1)  # (Tp, KG*D)
    logits = jnp.dot(im2col_g.astype(bf16), genw_ref[...],
                     preferred_element_type=f32)                    # (Tp, 128); lanes >= V == 0

    # ---------- JoinSegmenter.logit_segment (eval / mean-pool branch) ------------------
    t_col = jax.lax.broadcasted_iota(jnp.int32, (Tp, 1), 0)
    keep = t_col < len_b                                            # (Tp, 1) bool
    colv = jax.lax.broadcasted_iota(jnp.int32, (Tp, LN), 1)
    lanemask = colv < V

    lg = jnp.where(lanemask, logits, NEG)
    mx = jnp.max(lg, axis=1, keepdims=True)
    amax = jnp.min(jnp.where(lg == mx, colv, LN), axis=1, keepdims=True)   # (Tp,1) int32
    pred = jnp.where(keep, amax, -1)

    prev = jnp.concatenate([jnp.full((1, 1), -2, jnp.int32), pred[:Tp - 1, :]], axis=0)
    newseg = jnp.logical_and(pred != prev, keep).astype(f32)        # start of a kept run
    # tiny triangular-matmul prefix sum (TODO(synk): scan at realistic T)
    tri = (jax.lax.broadcasted_iota(jnp.int32, (Tp, Tp), 0)
           >= jax.lax.broadcasted_iota(jnp.int32, (Tp, Tp), 1)).astype(f32)
    cum = jnp.dot(tri, newseg, preferred_element_type=f32)          # inclusive cumsum (Tp,1)
    nseg = jnp.sum(newseg, axis=0, keepdims=True)                   # (1,1) kept segment count
    pos = jnp.where(keep, cum - 1.0, -1.0)                          # compacted segment id / -1

    # segment one-hot (time, segment) and mean-pool via a trans-A MXU contraction
    s_row = jax.lax.broadcasted_iota(jnp.int32, (Tp, Tp), 1).astype(f32)
    mt = (pos == s_row).astype(f32)                                 # (Tp time, Tp seg)
    dn = (((0,), (0,)), ((), ()))
    seg_sum = jax.lax.dot_general(mt, logits, dn, preferred_element_type=f32)   # (Tp, 128)
    cnt = jax.lax.dot_general(mt, jnp.ones((Tp, 1), f32), dn, preferred_element_type=f32)
    seg = seg_sum / jnp.maximum(cnt, 1.0)                           # mean-pool; empty rows -> 0

    # ---------- normalize(): masked softmax + hard one-hot statistics ------------------
    sl = jnp.where(lanemask, seg, NEG)
    smx = jnp.max(sl, axis=1, keepdims=True)
    e = jnp.exp(sl - smx)
    soft = e / jnp.sum(e, axis=1, keepdims=True)                    # pad lanes exactly 0
    hidx = jnp.min(jnp.where(sl == smx, colv, LN), axis=1, keepdims=True)
    hard = (colv == hidx).astype(f32)

    row_keep = (t_col.astype(f32) < nseg).astype(f32)               # (Tp,1) real segment rows
    hard_sum = jnp.sum(hard * row_keep, axis=0, keepdims=True)      # (1, 128)
    soft_sum = jnp.sum(soft * row_keep, axis=0, keepdims=True)      # (1, 128)

    # smoothness numerator: sum_{t+1 < nseg} || seg[t] - seg[t+1] ||^2 (pad lanes are 0)
    dif = seg[:Tp - 1, :] - seg[1:, :]
    t1 = jax.lax.broadcasted_iota(jnp.int32, (Tp - 1, 1), 0).astype(f32)
    pair_keep = (t1 + 1.0 < nseg).astype(f32)
    smooth_num = jnp.sum(jnp.sum(dif * dif, axis=1, keepdims=True) * pair_keep,
                         axis=0, keepdims=True)                     # (1, 1)

    # ---------- discriminator: causal convs, one wide-contraction matmul per layer -----
    biases = bias_ref[...]                                          # (8, 128)
    dw3 = dw3_ref[...]                                              # (8, 128)
    zpad_d = jnp.zeros((KD - 1, LN), f32)

    z1 = jnp.concatenate([zpad_d, soft], axis=0)                    # (Tp+KD-1, 128)
    im1 = jnp.concatenate([z1[k:k + Tp, :] for k in range(KD)], axis=1)      # (Tp, KD*128)
    h1 = jnp.dot(im1.astype(bf16), dw1_ref[...], preferred_element_type=f32) + biases[0:1, :]

    z2 = jnp.concatenate([zpad_d, h1], axis=0)
    im2 = jnp.concatenate([z2[k:k + Tp, :] for k in range(KD)], axis=1)      # (Tp, KD*128)
    h2 = _gelu_exact(jnp.dot(im2.astype(bf16), dw2_ref[...],
                             preferred_element_type=f32) + biases[1:2, :])

    # final H->1 tap on the VPU (elementwise mul + lane reduction), masked time-mean
    z3 = jnp.concatenate([zpad_d, h2], axis=0)
    acc3 = jnp.zeros((Tp, LN), f32)
    for k in range(KD):
        acc3 = acc3 + z3[k:k + Tp, :] * dw3[k:k + 1, :]
    score_t = jnp.sum(acc3, axis=1, keepdims=True) + biases[2:3, 0:1]        # (Tp, 1)
    score_sum = jnp.sum(score_t * row_keep, axis=0, keepdims=True)           # (1, 1)
    dense_y = score_sum * pl.reciprocal(jnp.maximum(nseg, 1.0), approx=True)

    # ---------- single unmasked (8, 128) lane-dense output store -----------------------
    zrow = jnp.zeros((1, LN), f32)
    out = jnp.concatenate([hard_sum,                     # row 0
                           soft_sum,                     # row 1
                           nseg + zrow,                  # row 2
                           smooth_num + zrow,            # row 3
                           dense_y + zrow,               # row 4
                           jnp.zeros((3, LN), f32)], axis=0)
    stats_ref[0] = out


# ----------------------------- parameters ----------------------------------------------
def init_params(key):
    ks = jax.random.split(key, 7)

    def w(k, shape, fan_in):
        return jax.random.normal(k, shape, jnp.float32) / np.sqrt(fan_in)

    return {
        "gen_w": w(ks[0], (GEN_KERNEL, INPUT_DIM, VOCAB), INPUT_DIM * GEN_KERNEL),
        "d_w1": w(ks[1], (DISC_KERNEL, VOCAB, DISC_DIM), VOCAB * DISC_KERNEL),
        "d_b1": w(ks[2], (1, DISC_DIM), VOCAB * DISC_KERNEL),
        "d_w2": w(ks[3], (DISC_KERNEL, DISC_DIM, DISC_DIM), DISC_DIM * DISC_KERNEL),
        "d_b2": w(ks[4], (1, DISC_DIM), DISC_DIM * DISC_KERNEL),
        "d_w3": w(ks[5], (DISC_KERNEL, DISC_DIM, 1), DISC_DIM * DISC_KERNEL),
        "d_b3": w(ks[6], (1, 1), DISC_DIM * DISC_KERNEL),
    }


# ----------------------------- Wav2vec_U.forward (generator step, eval) -----------------
def wav2vec_u_forward(params, features, padding_mask, random_label=None):
    B, T, D = features.shape
    V = VOCAB
    KG, PG, KD = GEN_KERNEL, GEN_KERNEL // 2, DISC_KERNEL
    Tp = T + 2 * PG - KG + 1                     # generator output length (> T)

    # Generator.forward pre-pends (Tp - T) non-pad frames; with trailing padding the kept
    # frames are a prefix of length Tp - n_pad  -> ship per-sample lengths (SMEM prefetch).
    n_pad = jnp.sum(padding_mask.astype(jnp.int32), axis=1)
    lens = (Tp - n_pad).astype(jnp.int32)                           # (B,)

    # ---- pack / lane-pad / pre-flatten the weights (host side, once) ------------------
    Hp = LANES
    genw = (jnp.zeros((KG * D, LANES), jnp.float32)
            .at[:, :V].set(params["gen_w"].reshape(KG * D, V))).astype(jnp.bfloat16)
    dw1 = (jnp.zeros((KD, LANES, Hp), jnp.float32)
           .at[:, :V, :DISC_DIM].set(params["d_w1"]))
    dw1f = dw1.reshape(KD * LANES, Hp).astype(jnp.bfloat16)
    dw2 = (jnp.zeros((KD, Hp, Hp), jnp.float32)
           .at[:, :DISC_DIM, :DISC_DIM].set(params["d_w2"]))
    dw2f = dw2.reshape(KD * Hp, Hp).astype(jnp.bfloat16)
    dw3 = (jnp.zeros((8, Hp), jnp.float32)
           .at[:KD, :DISC_DIM].set(params["d_w3"][:, :, 0]))
    biases = (jnp.zeros((8, LANES), jnp.float32)
              .at[0, :DISC_DIM].set(params["d_b1"][0])
              .at[1, :DISC_DIM].set(params["d_b2"][0])
              .at[2, 0].set(params["d_b3"][0, 0]))

    grid_spec = pltpu.PrefetchScalarGridSpec(
        num_scalar_prefetch=1,
        grid=(B,),
        in_specs=[
            pl.BlockSpec((1, T, D), lambda b, lens: (b, 0, 0)),         # features
            pl.BlockSpec((KG * D, LANES), lambda b, lens: (0, 0)),      # generator weight
            pl.BlockSpec((KD * LANES, LANES), lambda b, lens: (0, 0)),  # disc conv1 (flat)
            pl.BlockSpec((KD * LANES, LANES), lambda b, lens: (0, 0)),  # disc conv2 (flat)
            pl.BlockSpec((8, LANES), lambda b, lens: (0, 0)),           # disc conv3 taps
            pl.BlockSpec((8, LANES), lambda b, lens: (0, 0)),           # biases
        ],
        out_specs=pl.BlockSpec((1, 8, LANES), lambda b, lens: (b, 0, 0)),
    )

    stats = pl.pallas_call(
        _wav2vec_u_kernel,
        grid_spec=grid_spec,
        out_shape=jax.ShapeDtypeStruct((B, 8, LANES), jnp.float32),
        compiler_params=pltpu.CompilerParams(
            dimension_semantics=("parallel",),
            vmem_limit_bytes=32 * 1024 * 1024),
    )(lens, features, genw, dw1f, dw2f, dw3, biases)

    hard_sum = stats[:, 0, :V]          # (B, V) per-sample one-hot sums over real rows
    soft_sum = stats[:, 1, :V]          # (B, V) per-sample softmax sums over real rows
    nseg = stats[:, 2, 0]               # (B,)   kept segment counts
    smooth_num = stats[:, 3, 0]         # (B,)   smoothness numerators
    dense_y = stats[:, 4, 0]            # (B,)   discriminator scores on dense_x

    # ---- fairseq-exact batch reductions (tiny, done outside the kernel) ----------------
    fV = jnp.float32(V)
    has_pad = (lens < Tp).astype(jnp.float32)
    new_tsz = jnp.max(nseg + has_pad)                 # includes the "-1" run, like fairseq
    n_rows = jnp.float32(B) * new_tsz
    zero_rows = jnp.sum(new_tsz - nseg)               # all-zero rows across the batch
    onehot0 = jnp.zeros((V,), jnp.float32).at[0].set(1.0)
    hard_probs = (jnp.sum(hard_sum, axis=0) + zero_rows * onehot0) / n_rows
    avg_probs = (jnp.sum(soft_sum, axis=0) + zero_rows / fV) / n_rows
    code_ppl = jnp.exp(-jnp.sum(hard_probs * jnp.log(hard_probs + 1e-7)))
    prob_ppl = jnp.exp(-jnp.sum(avg_probs * jnp.log(avg_probs + 1e-7)))

    smooth_mean = jnp.sum(smooth_num) / jnp.maximum(
        jnp.float32(B) * (new_tsz - 1.0) * fV, 1.0)

    sample_size = B
    # generator step (update_num=0): BCE-with-logits vs zeros, reduction='sum'
    loss_dense = jnp.sum(jax.nn.softplus(dense_y))
    code_pen = (fV - prob_ppl) / fV * sample_size * CODE_PENALTY
    smoothness = smooth_mean * sample_size * SMOOTHNESS_WEIGHT

    # TODO(synk): token_y = discriminator(one_hot(random_label), ...) is only consumed on
    # discriminator steps (update_num odd); dead compute at the generator step -> skipped.
    del random_label

    return {
        "losses": {
            "grad_pen": None,
            "code_pen": code_pen,
            "smoothness": smoothness,
            "dense_gen": loss_dense,
            "token_gen": None,
        },
        "temp": MAX_TEMP,
        "code_ppl": code_ppl,
        "prob_ppl": prob_ppl,
        "d_steps": 0,
        "sample_size": sample_size,
    }


# ----------------------------- main ------------------------------------------------------
if __name__ == "__main__":
    key = jax.random.PRNGKey(0)
    pkey, fkey, lkey = jax.random.split(key, 3)
    params = init_params(pkey)

    B, T, L = 2, 16, 10
    features = jax.random.normal(fkey, (B, T, INPUT_DIM), jnp.float32)
    padding_mask = jnp.zeros((B, T), bool).at[0, 12:].set(True)
    random_label = jax.random.randint(lkey, (B, L), 0, VOCAB)

    result = wav2vec_u_forward(params, features, padding_mask, random_label)

    leaves = [x for x in jax.tree_util.tree_leaves(result) if isinstance(x, jax.Array)]
    jax.block_until_ready(leaves)
    print("KERNEL_OK")
</pallas_src>

<mosaic_0001>
module attributes {stable_mosaic.version = 11 : i64} {
  func.func @_wav2vec_u_kernel(%arg0: i32, %arg1: memref<2xi32, #tpu.memory_space<smem>>, %arg2: memref<1x16x32xf32, #tpu.memory_space<vmem>>, %arg3: memref<128x128xbf16, #tpu.memory_space<vmem>>, %arg4: memref<768x128xbf16, #tpu.memory_space<vmem>>, %arg5: memref<768x128xbf16, #tpu.memory_space<vmem>>, %arg6: memref<8x128xf32, #tpu.memory_space<vmem>>, %arg7: memref<8x128xf32, #tpu.memory_space<vmem>>, %arg8: memref<1x8x128xf32, #tpu.memory_space<vmem>>) attributes {dimension_semantics = [#tpu.dimension_semantics<parallel>], iteration_bounds = array<i64: 2>, scalar_prefetch = 1 : i64, scratch_operands = 0 : i64, tpu.core_type = #tpu.core_type<tc>, window_params = [{transform_indices = @transform_0, window_bounds = array<i64: 1, 16, 32>}, {pipeline_mode = #tpu.pipeline_mode<synchronous>, transform_indices = @transform_1, window_bounds = array<i64: 128, 128>}, {pipeline_mode = #tpu.pipeline_mode<synchronous>, transform_indices = @transform_2, window_bounds = array<i64: 768, 128>}, {pipeline_mode = #tpu.pipeline_mode<synchronous>, transform_indices = @transform_3, window_bounds = array<i64: 768, 128>}, {pipeline_mode = #tpu.pipeline_mode<synchronous>, transform_indices = @transform_4, window_bounds = array<i64: 8, 128>}, {pipeline_mode = #tpu.pipeline_mode<synchronous>, transform_indices = @transform_5, window_bounds = array<i64: 8, 128>}, {transform_indices = @transform_6, window_bounds = array<i64: 1, 8, 128>}]} {
    %0 = arith.index_cast %arg0 : i32 to index
    %1 = memref.load %arg1[%0] : memref<2xi32, #tpu.memory_space<smem>>
    %c0 = arith.constant 0 : index
    %c0_0 = arith.constant 0 : index
    %c0_1 = arith.constant 0 : index
    %2 = vector.load %arg2[%c0, %c0_0, %c0_1] : memref<1x16x32xf32, #tpu.memory_space<vmem>>, vector<1x16x32xf32>
    %3 = vector.shape_cast %2 : vector<1x16x32xf32> to vector<16x32xf32>
    %cst = arith.constant 0.000000e+00 : f32
    %4 = vector.broadcast %cst : f32 to vector<2x32xf32>
    %5 = tpu.concatenate %4, %3, %4 in 0 : vector<2x32xf32>, vector<16x32xf32>, vector<2x32xf32> -> vector<20x32xf32>
    %6 = vector.extract_strided_slice %5 {offsets = [0, 0], sizes = [17, 32], strides = [1, 1]} : vector<20x32xf32> to vector<17x32xf32>
    %7 = vector.extract_strided_slice %5 {offsets = [1, 0], sizes = [17, 32], strides = [1, 1]} : vector<20x32xf32> to vector<17x32xf32>
    %8 = vector.extract_strided_slice %5 {offsets = [2, 0], sizes = [17, 32], strides = [1, 1]} : vector<20x32xf32> to vector<17x32xf32>
    %9 = vector.extract_strided_slice %5 {offsets = [3, 0], sizes = [17, 32], strides = [1, 1]} : vector<20x32xf32> to vector<17x32xf32>
    %10 = tpu.concatenate %6, %7, %8, %9 in 1 : vector<17x32xf32>, vector<17x32xf32>, vector<17x32xf32>, vector<17x32xf32> -> vector<17x128xf32>
    %11 = arith.truncf %10 : vector<17x128xf32> to vector<17x128xbf16>
    %c0_2 = arith.constant 0 : index
    %c0_3 = arith.constant 0 : index
    %12 = vector.load %arg3[%c0_2, %c0_3] : memref<128x128xbf16, #tpu.memory_space<vmem>>, vector<128x128xbf16>
    %cst_4 = arith.constant dense<0.000000e+00> : vector<17x128xf32>
    %13 = tpu.matmul %11, %12, %cst_4 {dimension_numbers = #tpu.dot_dimension_numbers<[1], [0], [0], [1], [0, 0, 1, 1], [], []>} : vector<17x128xbf16>, vector<128x128xbf16>, vector<17x128xf32> -> vector<17x128xf32>
    %14 = tpu.iota {dimensions = array<i32: 0>} : vector<17x1xi32>
    %15 = vector.broadcast %1 : i32 to vector<17x1xi32>
    %16 = arith.cmpi slt, %14, %15 : vector<17x1xi32>
    %17 = tpu.iota {dimensions = array<i32: 1>} : vector<17x128xi32>
    %c16_i32 = arith.constant 16 : i32
    %18 = vector.broadcast %c16_i32 : i32 to vector<17x128xi32>
    %19 = arith.cmpi slt, %17, %18 : vector<17x128xi32>
    %cst_5 = arith.constant -1.000000e+30 : f32
    %20 = vector.broadcast %cst_5 : f32 to vector<17x128xf32>
    %21 = arith.select %19, %13, %20 : vector<17x128xi1>, vector<17x128xf32>
    %cst_6 = arith.constant dense<0xFF800000> : vector<17xf32>
    %22 = vector.multi_reduction <maximumf>, %21, %cst_6 [1] : vector<17x128xf32> to vector<17xf32>
    %23 = vector.shape_cast %22 : vector<17xf32> to vector<17x1xf32>
    %24 = vector.broadcast %23 : vector<17x1xf32> to vector<17x128xf32>
    %25 = arith.cmpf oeq, %21, %24 : vector<17x128xf32>
    %c128_i32 = arith.constant 128 : i32
    %26 = vector.broadcast %c128_i32 : i32 to vector<17x128xi32>
    %27 = arith.select %25, %17, %26 : vector<17x128xi1>, vector<17x128xi32>
    %cst_7 = arith.constant dense<2147483647> : vector<17xi32>
    %28 = vector.multi_reduction <minsi>, %27, %cst_7 [1] : vector<17x128xi32> to vector<17xi32>
    %29 = vector.shape_cast %28 : vector<17xi32> to vector<17x1xi32>
    %c-1_i32 = arith.constant -1 : i32
    %30 = vector.broadcast %c-1_i32 : i32 to vector<17x1xi32>
    %31 = arith.select %16, %29, %30 : vector<17x1xi1>, vector<17x1xi32>
    %c-2_i32 = arith.constant -2 : i32
    %32 = vector.broadcast %c-2_i32 : i32 to vector<1x1xi32>
    %33 = vector.extract_strided_slice %31 {offsets = [0, 0], sizes = [16, 1], strides = [1, 1]} : vector<17x1xi32> to vector<16x1xi32>
    %34 = tpu.concatenate %32, %33 in 0 : vector<1x1xi32>, vector<16x1xi32> -> vector<17x1xi32>
    %35 = arith.cmpi ne, %31, %34 : vector<17x1xi32>
    %36 = arith.andi %35, %16 : vector<17x1xi1>
    %37 = arith.extui %36 : vector<17x1xi1> to vector<17x1xi32>
    %38 = arith.sitofp %37 : vector<17x1xi32> to vector<17x1xf32>
    %39 = tpu.iota {dimensions = array<i32: 0>} : vector<17x17xi32>
    %40 = tpu.iota {dimensions = array<i32: 1>} : vector<17x17xi32>
    %41 = arith.cmpi sge, %39, %40 : vector<17x17xi32>
    %42 = arith.extui %41 : vector<17x17xi1> to vector<17x17xi32>
    %43 = arith.sitofp %42 : vector<17x17xi32> to vector<17x17xf32>
    %cst_8 = arith.constant dense<0.000000e+00> : vector<17x1xf32>
    %44 = tpu.matmul %43, %38, %cst_8 {dimension_numbers = #tpu.dot_dimension_numbers<[1], [0], [0], [1], [0, 0, 1, 1], [], []>} : vector<17x17xf32>, vector<17x1xf32>, vector<17x1xf32> -> vector<17x1xf32>
    %cst_9 = arith.constant dense<0.000000e+00> : vector<1xf32>
    %45 = vector.multi_reduction <add>, %38, %cst_9 [0] : vector<17x1xf32> to vector<1xf32>
    %46 = vector.shape_cast %45 : vector<1xf32> to vector<1x1xf32>
    %cst_10 = arith.constant 1.000000e+00 : f32
    %47 = vector.broadcast %cst_10 : f32 to vector<17x1xf32>
    %48 = arith.subf %44, %47 : vector<17x1xf32>
    %cst_11 = arith.constant -1.000000e+00 : f32
    %49 = vector.broadcast %cst_11 : f32 to vector<17x1xf32>
    %50 = arith.select %16, %48, %49 : vector<17x1xi1>, vector<17x1xf32>
    %51 = tpu.iota {dimensions = array<i32: 1>} : vector<17x17xi32>
    %52 = arith.sitofp %51 : vector<17x17xi32> to vector<17x17xf32>
    %53 = vector.broadcast %50 : vector<17x1xf32> to vector<17x17xf32>
    %54 = arith.cmpf oeq, %53, %52 : vector<17x17xf32>
    %55 = arith.extui %54 : vector<17x17xi1> to vector<17x17xi32>
    %56 = arith.sitofp %55 : vector<17x17xi32> to vector<17x17xf32>
    %cst_12 = arith.constant dense<0.000000e+00> : vector<17x128xf32>
    %57 = tpu.matmul %56, %13, %cst_12 {dimension_numbers = #tpu.dot_dimension_numbers<[0], [0], [1], [1], [0, 1, 1, 1], [], []>} : vector<17x17xf32>, vector<17x128xf32>, vector<17x128xf32> -> vector<17x128xf32>
    %cst_13 = arith.constant 1.000000e+00 : f32
    %58 = vector.broadcast %cst_13 : f32 to vector<17x1xf32>
    %cst_14 = arith.constant dense<0.000000e+00> : vector<17x1xf32>
    %59 = tpu.matmul %56, %58, %cst_14 {dimension_numbers = #tpu.dot_dimension_numbers<[0], [0], [1], [1], [0, 1, 1, 1], [], []>} : vector<17x17xf32>, vector<17x1xf32>, vector<17x1xf32> -> vector<17x1xf32>
    %cst_15 = arith.constant 1.000000e+00 : f32
    %60 = vector.broadcast %cst_15 : f32 to vector<17x1xf32>
    %61 = arith.maximumf %59, %60 : vector<17x1xf32>
    %62 = vector.broadcast %61 : vector<17x1xf32> to vector<17x128xf32>
    %63 = arith.divf %57, %62 : vector<17x128xf32>
    %cst_16 = arith.constant -1.000000e+30 : f32
    %64 = vector.broadcast %cst_16 : f32 to vector<17x128xf32>
    %65 = arith.select %19, %63, %64 : vector<17x128xi1>, vector<17x128xf32>
    %cst_17 = arith.constant dense<0xFF800000> : vector<17xf32>
    %66 = vector.multi_reduction <maximumf>, %65, %cst_17 [1] : vector<17x128xf32> to vector<17xf32>
    %67 = vector.shape_cast %66 : vector<17xf32> to vector<17x1xf32>
    %68 = vector.broadcast %67 : vector<17x1xf32> to vector<17x128xf32>
    %69 = arith.subf %65, %68 : vector<17x128xf32>
    %70 = math.exp %69 : vector<17x128xf32>
    %cst_18 = arith.constant dense<0.000000e+00> : vector<17xf32>
    %71 = vector.multi_reduction <add>, %70, %cst_18 [1] : vector<17x128xf32> to vector<17xf32>
    %72 = vector.shape_cast %71 : vector<17xf32> to vector<17x1xf32>
    %73 = vector.broadcast %72 : vector<17x1xf32> to vector<17x128xf32>
    %74 = arith.divf %70, %73 : vector<17x128xf32>
    %75 = vector.broadcast %67 : vector<17x1xf32> to vector<17x128xf32>
    %76 = arith.cmpf oeq, %65, %75 : vector<17x128xf32>
    %c128_i32_19 = arith.constant 128 : i32
    %77 = vector.broadcast %c128_i32_19 : i32 to vector<17x128xi32>
    %78 = arith.select %76, %17, %77 : vector<17x128xi1>, vector<17x128xi32>
    %cst_20 = arith.constant dense<2147483647> : vector<17xi32>
    %79 = vector.multi_reduction <minsi>, %78, %cst_20 [1] : vector<17x128xi32> to vector<17xi32>
    %80 = vector.shape_cast %79 : vector<17xi32> to vector<17x1xi32>
    %81 = vector.broadcast %80 : vector<17x1xi32> to vector<17x128xi32>
    %82 = arith.cmpi eq, %17, %81 : vector<17x128xi32>
    %83 = arith.extui %82 : vector<17x128xi1> to vector<17x128xi32>
    %84 = arith.sitofp %83 : vector<17x128xi32> to vector<17x128xf32>
    %85 = arith.sitofp %14 : vector<17x1xi32> to vector<17x1xf32>
    %86 = vector.broadcast %46 : vector<1x1xf32> to vector<17x1xf32>
    %87 = arith.cmpf olt, %85, %86 : vector<17x1xf32>
    %88 = arith.extui %87 : vector<17x1xi1> to vector<17x1xi32>
    %89 = arith.sitofp %88 : vector<17x1xi32> to vector<17x1xf32>
    %90 = vector.broadcast %89 : vector<17x1xf32> to vector<17x128xf32>
    %91 = arith.mulf %84, %90 : vector<17x128xf32>
    %cst_21 = arith.constant dense<0.000000e+00> : vector<128xf32>
    %92 = vector.multi_reduction <add>, %91, %cst_21 [0] : vector<17x128xf32> to vector<128xf32>
    %93 = vector.shape_cast %92 : vector<128xf32> to vector<1x128xf32>
    %94 = vector.broadcast %89 : vector<17x1xf32> to vector<17x128xf32>
    %95 = arith.mulf %74, %94 : vector<17x128xf32>
    %cst_22 = arith.constant dense<0.000000e+00> : vector<128xf32>
    %96 = vector.multi_reduction <add>, %95, %cst_22 [0] : vector<17x128xf32> to vector<128xf32>
    %97 = vector.shape_cast %96 : vector<128xf32> to vector<1x128xf32>
    %98 = vector.extract_strided_slice %63 {offsets = [0, 0], sizes = [16, 128], strides = [1, 1]} : vector<17x128xf32> to vector<16x128xf32>
    %99 = vector.extract_strided_slice %63 {offsets = [1, 0], sizes = [16, 128], strides = [1, 1]} : vector<17x128xf32> to vector<16x128xf32>
    %100 = arith.subf %98, %99 : vector<16x128xf32>
    %101 = tpu.iota {dimensions = array<i32: 0>} : vector<16x1xi32>
    %102 = arith.sitofp %101 : vector<16x1xi32> to vector<16x1xf32>
    %cst_23 = arith.constant 1.000000e+00 : f32
    %103 = vector.broadcast %cst_23 : f32 to vector<16x1xf32>
    %104 = arith.addf %102, %103 : vector<16x1xf32>
    %105 = vector.broadcast %46 : vector<1x1xf32> to vector<16x1xf32>
    %106 = arith.cmpf olt, %104, %105 : vector<16x1xf32>
    %107 = arith.extui %106 : vector<16x1xi1> to vector<16x1xi32>
    %108 = arith.sitofp %107 : vector<16x1xi32> to vector<16x1xf32>
    %109 = arith.mulf %100, %100 : vector<16x128xf32>
    %cst_24 = arith.constant dense<0.000000e+00> : vector<16xf32>
    %110 = vector.multi_reduction <add>, %109, %cst_24 [1] : vector<16x128xf32> to vector<16xf32>
    %111 = vector.shape_cast %110 : vector<16xf32> to vector<16x1xf32>
    %112 = arith.mulf %111, %108 : vector<16x1xf32>
    %cst_25 = arith.constant dense<0.000000e+00> : vector<1xf32>
    %113 = vector.multi_reduction <add>, %112, %cst_25 [0] : vector<16x1xf32> to vector<1xf32>
    %114 = vector.shape_cast %113 : vector<1xf32> to vector<1x1xf32>
    %c0_26 = arith.constant 0 : index
    %c0_27 = arith.constant 0 : index
    %115 = vector.load %arg7[%c0_26, %c0_27] : memref<8x128xf32, #tpu.memory_space<vmem>>, vector<8x128xf32>
    %c0_28 = arith.constant 0 : index
    %c0_29 = arith.constant 0 : index
    %116 = vector.load %arg6[%c0_28, %c0_29] : memref<8x128xf32, #tpu.memory_space<vmem>>, vector<8x128xf32>
    %cst_30 = arith.constant 0.000000e+00 : f32
    %117 = vector.broadcast %cst_30 : f32 to vector<5x128xf32>
    %118 = tpu.concatenate %117, %74 in 0 : vector<5x128xf32>, vector<17x128xf32> -> vector<22x128xf32>
    %119 = vector.extract_strided_slice %118 {offsets = [0, 0], sizes = [17, 128], strides = [1, 1]} : vector<22x128xf32> to vector<17x128xf32>
    %120 = vector.extract_strided_slice %118 {offsets = [1, 0], sizes = [17, 128], strides = [1, 1]} : vector<22x128xf32> to vector<17x128xf32>
    %121 = vector.extract_strided_slice %118 {offsets = [2, 0], sizes = [17, 128], strides = [1, 1]} : vector<22x128xf32> to vector<17x128xf32>
    %122 = vector.extract_strided_slice %118 {offsets = [3, 0], sizes = [17, 128], strides = [1, 1]} : vector<22x128xf32> to vector<17x128xf32>
    %123 = vector.extract_strided_slice %118 {offsets = [4, 0], sizes = [17, 128], strides = [1, 1]} : vector<22x128xf32> to vector<17x128xf32>
    %124 = vector.extract_strided_slice %118 {offsets = [5, 0], sizes = [17, 128], strides = [1, 1]} : vector<22x128xf32> to vector<17x128xf32>
    %125 = tpu.concatenate %119, %120, %121, %122, %123, %124 in 1 : vector<17x128xf32>, vector<17x128xf32>, vector<17x128xf32>, vector<17x128xf32>, vector<17x128xf32>, vector<17x128xf32> -> vector<17x768xf32>
    %126 = arith.truncf %125 : vector<17x768xf32> to vector<17x768xbf16>
    %c0_31 = arith.constant 0 : index
    %c0_32 = arith.constant 0 : index
    %127 = vector.load %arg4[%c0_31, %c0_32] : memref<768x128xbf16, #tpu.memory_space<vmem>>, vector<768x128xbf16>
    %cst_33 = arith.constant dense<0.000000e+00> : vector<17x128xf32>
    %128 = tpu.matmul %126, %127, %cst_33 {dimension_numbers = #tpu.dot_dimension_numbers<[1], [0], [0], [1], [0, 0, 1, 1], [], []>} : vector<17x768xbf16>, vector<768x128xbf16>, vector<17x128xf32> -> vector<17x128xf32>
    %129 = vector.extract_strided_slice %115 {offsets = [0, 0], sizes = [1, 128], strides = [1, 1]} : vector<8x128xf32> to vector<1x128xf32>
    %130 = vector.broadcast %129 : vector<1x128xf32> to vector<17x128xf32>
    %131 = arith.addf %128, %130 : vector<17x128xf32>
    %132 = tpu.concatenate %117, %131 in 0 : vector<5x128xf32>, vector<17x128xf32> -> vector<22x128xf32>
    %133 = vector.extract_strided_slice %132 {offsets = [0, 0], sizes = [17, 128], strides = [1, 1]} : vector<22x128xf32> to vector<17x128xf32>
    %134 = vector.extract_strided_slice %132 {offsets = [1, 0], sizes = [17, 128], strides = [1, 1]} : vector<22x128xf32> to vector<17x128xf32>
    %135 = vector.extract_strided_slice %132 {offsets = [2, 0], sizes = [17, 128], strides = [1, 1]} : vector<22x128xf32> to vector<17x128xf32>
    %136 = vector.extract_strided_slice %132 {offsets = [3, 0], sizes = [17, 128], strides = [1, 1]} : vector<22x128xf32> to vector<17x128xf32>
    %137 = vector.extract_strided_slice %132 {offsets = [4, 0], sizes = [17, 128], strides = [1, 1]} : vector<22x128xf32> to vector<17x128xf32>
    %138 = vector.extract_strided_slice %132 {offsets = [5, 0], sizes = [17, 128], strides = [1, 1]} : vector<22x128xf32> to vector<17x128xf32>
    %139 = tpu.concatenate %133, %134, %135, %136, %137, %138 in 1 : vector<17x128xf32>, vector<17x128xf32>, vector<17x128xf32>, vector<17x128xf32>, vector<17x128xf32>, vector<17x128xf32> -> vector<17x768xf32>
    %140 = arith.truncf %139 : vector<17x768xf32> to vector<17x768xbf16>
    %c0_34 = arith.constant 0 : index
    %c0_35 = arith.constant 0 : index
    %141 = vector.load %arg5[%c0_34, %c0_35] : memref<768x128xbf16, #tpu.memory_space<vmem>>, vector<768x128xbf16>
    %cst_36 = arith.constant dense<0.000000e+00> : vector<17x128xf32>
    %142 = tpu.matmul %140, %141, %cst_36 {dimension_numbers = #tpu.dot_dimension_numbers<[1], [0], [0], [1], [0, 0, 1, 1], [], []>} : vector<17x768xbf16>, vector<768x128xbf16>, vector<17x128xf32> -> vector<17x128xf32>
    %143 = vector.extract_strided_slice %115 {offsets = [1, 0], sizes = [1, 128], strides = [1, 1]} : vector<8x128xf32> to vector<1x128xf32>
    %144 = vector.broadcast %143 : vector<1x128xf32> to vector<17x128xf32>
    %145 = arith.addf %142, %144 : vector<17x128xf32>
    %cst_37 = arith.constant 5.000000e-01 : f32
    %146 = vector.broadcast %cst_37 : f32 to vector<17x128xf32>
    %147 = arith.mulf %146, %145 : vector<17x128xf32>
    %cst_38 = arith.constant 0.707106769 : f32
    %148 = vector.broadcast %cst_38 : f32 to vector<17x128xf32>
    %149 = arith.mulf %145, %148 : vector<17x128xf32>
    %150 = math.absf %149 : vector<17x128xf32>
    %cst_39 = arith.constant 0.327591091 : f32
    %151 = vector.broadcast %cst_39 : f32 to vector<17x128xf32>
    %152 = arith.mulf %151, %150 : vector<17x128xf32>
    %cst_40 = arith.constant 1.000000e+00 : f32
    %153 = vector.broadcast %cst_40 : f32 to vector<17x128xf32>
    %154 = arith.addf %153, %152 : vector<17x128xf32>
    %cst_41 = arith.constant 1.000000e+00 : f32
    %155 = vector.broadcast %cst_41 : f32 to vector<17x128xf32>
    %156 = arith.divf %155, %154 : vector<17x128xf32>
    %cst_42 = arith.constant 1.06140542 : f32
    %157 = vector.broadcast %cst_42 : f32 to vector<17x128xf32>
    %158 = arith.mulf %157, %156 : vector<17x128xf32>
    %cst_43 = arith.constant -1.45315206 : f32
    %159 = vector.broadcast %cst_43 : f32 to vector<17x128xf32>
    %160 = arith.addf %158, %159 : vector<17x128xf32>
    %161 = arith.mulf %160, %156 : vector<17x128xf32>
    %cst_44 = arith.constant 1.42141378 : f32
    %162 = vector.broadcast %cst_44 : f32 to vector<17x128xf32>
    %163 = arith.addf %161, %162 : vector<17x128xf32>
    %164 = arith.mulf %163, %156 : vector<17x128xf32>
    %cst_45 = arith.constant -0.284496725 : f32
    %165 = vector.broadcast %cst_45 : f32 to vector<17x128xf32>
    %166 = arith.addf %164, %165 : vector<17x128xf32>
    %167 = arith.mulf %166, %156 : vector<17x128xf32>
    %cst_46 = arith.constant 0.254829586 : f32
    %168 = vector.broadcast %cst_46 : f32 to vector<17x128xf32>
    %169 = arith.addf %167, %168 : vector<17x128xf32>
    %170 = arith.mulf %169, %156 : vector<17x128xf32>
    %cst_47 = arith.constant 0.000000e+00 : f32
    %171 = vector.broadcast %cst_47 : f32 to vector<17x128xf32>
    %172 = arith.subf %171, %150 : vector<17x128xf32>
    %173 = arith.mulf %172, %150 : vector<17x128xf32>
    %174 = math.exp %173 : vector<17x128xf32>
    %175 = arith.mulf %170, %174 : vector<17x128xf32>
    %cst_48 = arith.constant 1.000000e+00 : f32
    %176 = vector.broadcast %cst_48 : f32 to vector<17x128xf32>
    %177 = arith.subf %176, %175 : vector<17x128xf32>
    %cst_49 = arith.constant 0.000000e+00 : f32
    %178 = vector.broadcast %cst_49 : f32 to vector<17x128xf32>
    %179 = arith.cmpf oge, %149, %178 : vector<17x128xf32>
    %cst_50 = arith.constant 0.000000e+00 : f32
    %180 = vector.broadcast %cst_50 : f32 to vector<17x128xf32>
    %181 = arith.subf %180, %177 : vector<17x128xf32>
    %182 = arith.select %179, %177, %181 : vector<17x128xi1>, vector<17x128xf32>
    %cst_51 = arith.constant 1.000000e+00 : f32
    %183 = vector.broadcast %cst_51 : f32 to vector<17x128xf32>
    %184 = arith.addf %183, %182 : vector<17x128xf32>
    %185 = arith.mulf %147, %184 : vector<17x128xf32>
    %186 = tpu.concatenate %117, %185 in 0 : vector<5x128xf32>, vector<17x128xf32> -> vector<22x128xf32>
    %cst_52 = arith.constant 0.000000e+00 : f32
    %187 = vector.broadcast %cst_52 : f32 to vector<17x128xf32>
    %188 = vector.extract_strided_slice %186 {offsets = [0, 0], sizes = [17, 128], strides = [1, 1]} : vector<22x128xf32> to vector<17x128xf32>
    %189 = vector.extract_strided_slice %116 {offsets = [0, 0], sizes = [1, 128], strides = [1, 1]} : vector<8x128xf32> to vector<1x128xf32>
    %190 = vector.broadcast %189 : vector<1x128xf32> to vector<17x128xf32>
    %191 = arith.mulf %188, %190 : vector<17x128xf32>
    %192 = arith.addf %187, %191 : vector<17x128xf32>
    %193 = vector.extract_strided_slice %186 {offsets = [1, 0], sizes = [17, 128], strides = [1, 1]} : vector<22x128xf32> to vector<17x128xf32>
    %194 = vector.extract_strided_slice %116 {offsets = [1, 0], sizes = [1, 128], strides = [1, 1]} : vector<8x128xf32> to vector<1x128xf32>
    %195 = vector.broadcast %194 : vector<1x128xf32> to vector<17x128xf32>
    %196 = arith.mulf %193, %195 : vector<17x128xf32>
    %197 = arith.addf %192, %196 : vector<17x128xf32>
    %198 = vector.extract_strided_slice %186 {offsets = [2, 0], sizes = [17, 128], strides = [1, 1]} : vector<22x128xf32> to vector<17x128xf32>
    %199 = vector.extract_strided_slice %116 {offsets = [2, 0], sizes = [1, 128], strides = [1, 1]} : vector<8x128xf32> to vector<1x128xf32>
    %200 = vector.broadcast %199 : vector<1x128xf32> to vector<17x128xf32>
    %201 = arith.mulf %198, %200 : vector<17x128xf32>
    %202 = arith.addf %197, %201 : vector<17x128xf32>
    %203 = vector.extract_strided_slice %186 {offsets = [3, 0], sizes = [17, 128], strides = [1, 1]} : vector<22x128xf32> to vector<17x128xf32>
    %204 = vector.extract_strided_slice %116 {offsets = [3, 0], sizes = [1, 128], strides = [1, 1]} : vector<8x128xf32> to vector<1x128xf32>
    %205 = vector.broadcast %204 : vector<1x128xf32> to vector<17x128xf32>
    %206 = arith.mulf %203, %205 : vector<17x128xf32>
    %207 = arith.addf %202, %206 : vector<17x128xf32>
    %208 = vector.extract_strided_slice %186 {offsets = [4, 0], sizes = [17, 128], strides = [1, 1]} : vector<22x128xf32> to vector<17x128xf32>
    %209 = vector.extract_strided_slice %116 {offsets = [4, 0], sizes = [1, 128], strides = [1, 1]} : vector<8x128xf32> to vector<1x128xf32>
    %210 = vector.broadcast %209 : vector<1x128xf32> to vector<17x128xf32>
    %211 = arith.mulf %208, %210 : vector<17x128xf32>
    %212 = arith.addf %207, %211 : vector<17x128xf32>
    %213 = vector.extract_strided_slice %186 {offsets = [5, 0], sizes = [17, 128], strides = [1, 1]} : vector<22x128xf32> to vector<17x128xf32>
    %214 = vector.extract_strided_slice %116 {offsets = [5, 0], sizes = [1, 128], strides = [1, 1]} : vector<8x128xf32> to vector<1x128xf32>
    %215 = vector.broadcast %214 : vector<1x128xf32> to vector<17x128xf32>
    %216 = arith.mulf %213, %215 : vector<17x128xf32>
    %217 = arith.addf %212, %216 : vector<17x128xf32>
    %cst_53 = arith.constant dense<0.000000e+00> : vector<17xf32>
    %218 = vector.multi_reduction <add>, %217, %cst_53 [1] : vector<17x128xf32> to vector<17xf32>
    %219 = vector.shape_cast %218 : vector<17xf32> to vector<17x1xf32>
    %220 = vector.extract_strided_slice %115 {offsets = [2, 0], sizes = [1, 1], strides = [1, 1]} : vector<8x128xf32> to vector<1x1xf32>
    %221 = vector.broadcast %220 : vector<1x1xf32> to vector<17x1xf32>
    %222 = arith.addf %219, %221 : vector<17x1xf32>
    %223 = arith.mulf %222, %89 : vector<17x1xf32>
    %cst_54 = arith.constant dense<0.000000e+00> : vector<1xf32>
    %224 = vector.multi_reduction <add>, %223, %cst_54 [0] : vector<17x1xf32> to vector<1xf32>
    %225 = vector.shape_cast %224 : vector<1xf32> to vector<1x1xf32>
    %cst_55 = arith.constant 1.000000e+00 : f32
    %226 = vector.broadcast %cst_55 : f32 to vector<1x1xf32>
    %227 = arith.maximumf %46, %226 : vector<1x1xf32>
    %228 = tpu.reciprocal %227 {approx = true} : vector<1x1xf32> -> vector<1x1xf32>
    %229 = arith.mulf %225, %228 : vector<1x1xf32>
    %cst_56 = arith.constant 0.000000e+00 : f32
    %230 = vector.broadcast %cst_56 : f32 to vector<1x128xf32>
    %231 = vector.broadcast %46 : vector<1x1xf32> to vector<1x128xf32>
    %232 = arith.addf %231, %230 : vector<1x128xf32>
    %233 = vector.broadcast %114 : vector<1x1xf32> to vector<1x128xf32>
    %234 = arith.addf %233, %230 : vector<1x128xf32>
    %235 = vector.broadcast %229 : vector<1x1xf32> to vector<1x128xf32>
    %236 = arith.addf %235, %230 : vector<1x128xf32>
    %cst_57 = arith.constant 0.000000e+00 : f32
    %237 = vector.broadcast %cst_57 : f32 to vector<3x128xf32>
    %238 = tpu.concatenate %93, %97, %232, %234, %236, %237 in 0 : vector<1x128xf32>, vector<1x128xf32>, vector<1x128xf32>, vector<1x128xf32>, vector<1x128xf32>, vector<3x128xf32> -> vector<8x128xf32>
    %c0_58 = arith.constant 0 : index
    %c0_59 = arith.constant 0 : index
    %c0_60 = arith.constant 0 : index
    %239 = vector.load %arg8[%c0_58, %c0_59, %c0_60] : memref<1x8x128xf32, #tpu.memory_space<vmem>>, vector<1x8x128xf32>
    %240 = vector.shape_cast %239 : vector<1x8x128xf32> to vector<8x128xf32>
    %241 = vector.shape_cast %238 : vector<8x128xf32> to vector<1x8x128xf32>
    tpu.vector_store %arg8[%c0_58, %c0_59, %c0_60], %241 {strides = array<i32>} : memref<1x8x128xf32, #tpu.memory_space<vmem>>, vector<1x8x128xf32>,
    return
  }
  func.func @transform_0(%arg0: i32, %arg1: memref<2xi32, #tpu.memory_space<smem>>) -> (i32, i32, i32) {
    %c0_i32 = arith.constant 0 : i32
    %c0_i32_0 = arith.constant 0 : i32
    %c0_i32_1 = arith.constant 0 : i32
    return %arg0, %c0_i32, %c0_i32_0 : i32, i32, i32
  }
  func.func @transform_1(%arg0: i32, %arg1: memref<2xi32, #tpu.memory_space<smem>>) -> (i32, i32) {
    %c0_i32 = arith.constant 0 : i32
    %c0_i32_0 = arith.constant 0 : i32
    %c0_i32_1 = arith.constant 0 : i32
    return %c0_i32, %c0_i32_0 : i32, i32
  }
  func.func @transform_2(%arg0: i32, %arg1: memref<2xi32, #tpu.memory_space<smem>>) -> (i32, i32) {
    %c0_i32 = arith.constant 0 : i32
    %c0_i32_0 = arith.constant 0 : i32
    %c0_i32_1 = arith.constant 0 : i32
    return %c0_i32, %c0_i32_0 : i32, i32
  }
  func.func @transform_3(%arg0: i32, %arg1: memref<2xi32, #tpu.memory_space<smem>>) -> (i32, i32) {
    %c0_i32 = arith.constant 0 : i32
    %c0_i32_0 = arith.constant 0 : i32
    %c0_i32_1 = arith.constant 0 : i32
    return %c0_i32, %c0_i32_0 : i32, i32
  }
  func.func @transform_4(%arg0: i32, %arg1: memref<2xi32, #tpu.memory_space<smem>>) -> (i32, i32) {
    %c0_i32 = arith.constant 0 : i32
    %c0_i32_0 = arith.constant 0 : i32
    %c0_i32_1 = arith.constant 0 : i32
    return %c0_i32, %c0_i32_0 : i32, i32
  }
  func.func @transform_5(%arg0: i32, %arg1: memref<2xi32, #tpu.memory_space<smem>>) -> (i32, i32) {
    %c0_i32 = arith.constant 0 : i32
    %c0_i32_0 = arith.constant 0 : i32
    %c0_i32_1 = arith.constant 0 : i32
    return %c0_i32, %c0_i32_0 : i32, i32
  }
  func.func @transform_6(%arg0: i32, %arg1: memref<2xi32, #tpu.memory_space<smem>>) -> (i32, i32, i32) {
    %c0_i32 = arith.constant 0 : i32
    %c0_i32_0 = arith.constant 0 : i32
    %c0_i32_1 = arith.constant 0 : i32
    return %arg0, %c0_i32, %c0_i32_0 : i32, i32, i32
  }
}

</mosaic_0001>

<bundles_post_ra>
// kernel: tpu_custom_call.1
= control target key start
LH: loop header
LB: loop body
LE: loop exit
PB: predicated region body
PF: predicated region fallthrough
CT: control target
= control target key end

     0   :  { %s3650_s24 = smov [#allocation3]   ;;  %s4319_s0 = inlined_call_operand.hbm [shape: s32[2], index: 0, kind: input, shape index: {}]   ;;  %s4320_s1 = inlined_call_operand.hbm [shape: f32[2,16,32], index: 1, kind: input, shape index: {}]   ;;  %s4321_s2 = inlined_call_operand.hbm [shape: bf16[128,128], index: 2, kind: input, shape index: {}]   ;;  %s4322_s3 = inlined_call_operand.hbm [shape: bf16[768,128], index: 3, kind: input, shape index: {}]   ;;  %s4323_s4 = inlined_call_operand.hbm [shape: bf16[768,128], index: 4, kind: input, shape index: {}]   ;;  %s4324_s5 = inlined_call_operand.vmem [shape: f32[8,128], index: 5, kind: input, shape index: {}]   ;;  %s4325_s6 = inlined_call_operand.hbm [shape: f32[8,128], index: 6, kind: input, shape index: {}]   ;;  %s4326_s7 = inlined_call_operand.hbm [shape: f32[2,8,128], index: 7, kind: output, shape index: {}]  }
   0x1   :  { %13 = dma.hbm_to_smem %s4319_s0, 16, %s3650_s24, [#allocation2] }
   0x2   :  { %3616 = dma.done.wait [#allocation2], 16 }
   0x3   :  { %3617 = vsyncadd [#allocation2], 4294967280 }
   0x4   :  { %15 = sfence }
   0x5   :  { %16 = vsyncpa [#allocation5], 0 }
   0x6   :  { %18 = vsyncpa [#allocation5 + $0x1], 0 }
   0x7   :  { %19 = vsyncpa [#allocation8], 0 }
   0x8   :  { %20 = vsyncpa [#allocation11], 0 }
   0x9   :  { %21 = vsyncpa [#allocation6], 0 }
   0xa   :  { %23 = vsyncpa [#allocation6 + $0x1], 0  ;;  %s3712_s27 = smov 0   ;;  %s3714_s28 = smov 0  }
   0xb   :  { %s3716_s29 = smov 0   ;;  %s3718_s30 = smov 0  }
   0xc LB: > { %s3733_s0 = sadd.s32 4294967295, %s3648_s30   ;;  %s2747_s8 = sadd.s32 4294967294, %s3648_s30   ;;  %s3648_s30 = sphi %s3718_s30, %s4361_s30   ;;  %s3644_s29 = sphi %s3716_s29, %s4360_s29   ;;  %s3640_s28 = sphi %s3714_s28, %s4359_s28   ;;  %s3636_s27 = sphi %s3712_s27, %s4358_s27  }
   0xd   : > { %p49_p0 = scmp.ne.s32.totalorder %s3640_s28, %s3636_s27  ;;  %p4327_p1 = scmp.eq.s32.totalorder %s3733_s0, 0 }
   0xe   : > { %p184_p3 = scmp.eq.s32.totalorder %s2747_s8, 1  ;;  %p2748_p5 = scmp.ge.s32.totalorder %s3648_s30, 1 }
   0xf   : > { %p3742_p4 = por %p4327_p1, %p49_p0  ;;  %p191_p7 = scmp.lt.s32.totalorder %s3648_s30, 3 }
  0x10   : > { %p3747_p6 = por %p184_p3, %p49_p0  ;;  %s3651_s12 = smov [#allocation7]  }
  0x11   : > { %s4333_s9 = scalar_select %p3742_p4, 1, 0 }
  0x12   : > { %s4334_s10 = scalar_select %p3747_p6, 1, 0 }
  0x13   : > { %p3752_p8 = pnand %p2748_p5, %p191_p7  ;;  %s203_s13 = sshll.u32 %s3651_s12, 4  ;;  %s204_s13 = int_to_ptr.vmem [resolvable:$true] %s203_s13 }
  0x14   : > { %s3652_s15 = smov [#allocation10]   ;;  %s3653_s17 = smov [#allocation9]  }
  0x15   : > { %s4335_s11 = scalar_select %p3752_p8, 1, 0 }
  0x16   : > { %p3196_p9 = pneg %p3752_p8  ;;  %s229_s16 = sshll.u32 %s3652_s15, 4  ;;  %s230_s16 = int_to_ptr.vmem [resolvable:$true] %s229_s16 }
  0x17   : > { %s216_s18 = sshll.u32 %s3653_s17, 4  ;;  %s3453_s19 = scalar_lea.vmem %s204_s13, 1024  ;;  %s217_s18 = int_to_ptr.vmem [resolvable:$true] %s216_s18 }
  0x18   : > { %p3761_p11 = pnand %p3196_p9, %p4327_p1  ;;  %p3454_p13 = scmp.ne.s32.totalorder %s204_s13, %s3453_s19 }
  0x19   : > { %p3461_p5 = scmp.lt.s32.totalorder %s204_s13, %s204_s13  ;;  %p3462_p7 = scmp.lt.s32.totalorder %s3453_s19, %s3453_s19 }
  0x1a   : > { %p3444_p12 = pneg %p3761_p11 }
  0x1b   : > { %p3463_p9 = por %p3462_p7, %p3461_p5 }
  0x1c   : > { %p3456_p0 = pnand %p3454_p13, %p3444_p12 }
  0x1e   : > { %p3457_p3 = pneg %p3456_p0 }
  0x20   : > { %p3464_p10 = pnand %p3463_p9, %p3457_p3 }
  0x22   : > { %3467 = shalt.err (!%p3464_p10)
}
  0x23   : > { %s3654_s20 = smov 64   ;;  %s3655_s21 = smov 4  }
  0x24   : > { %3199 = dma.hbm_to_vmem [thread:$0]  (!%p3761_p11), %s4321_s2, 1024, %s204_s13, [#allocation8], %s3654_s20, %s3654_s20, %s3655_s21  }
  0x25   : > { %s3479_s24 = scalar_lea.vmem %s230_s16, 6144  ;;  %p3487_p2 = scmp.lt.s32.totalorder %s230_s16, %s230_s16 }
  0x26   : > { %p3480_p1 = scmp.ne.s32.totalorder %s230_s16, %s3479_s24  ;;  %p3488_p6 = scmp.lt.s32.totalorder %s3479_s24, %s3479_s24 }
  0x28   : > { %p3482_p13 = pnand %p3480_p1, %p3444_p12  ;;  %p3489_p5 = por %p3488_p6, %p3487_p2 }
  0x2a   : > { %p3483_p0 = pneg %p3482_p13 }
  0x2c   : > { %p3490_p3 = pnand %p3489_p5, %p3483_p0 }
  0x2e   : > { %3493 = shalt.err (!%p3490_p3)
}
  0x2f   : > { %3205 = dma.hbm_to_vmem [thread:$0]  (!%p3761_p11), %s4323_s4, 6144, %s230_s16, [#allocation11], %s3654_s20, %s3654_s20, %s3655_s21  }
  0x30   : > { %s3505_s8 = scalar_lea.vmem %s217_s18, 6144  ;;  %p3513_p9 = scmp.lt.s32.totalorder %s217_s18, %s217_s18 }
  0x31   : > { %p3506_p10 = scmp.ne.s32.totalorder %s217_s18, %s3505_s8  ;;  %p3514_p13 = scmp.lt.s32.totalorder %s3505_s8, %s3505_s8 }
  0x33   : > { %p3508_p7 = pnand %p3506_p10, %p3444_p12  ;;  %p3515_p4 = por %p3514_p13, %p3513_p9 }
  0x35   : > { %p3509_p1 = pneg %p3508_p7 }
  0x37   : > { %p3516_p2 = pnand %p3515_p4, %p3509_p1 }
  0x39   : > { %3519 = shalt.err (!%p3516_p2)
}
  0x3a   : > { %3202 = dma.hbm_to_vmem [thread:$0]  (!%p3761_p11), %s4322_s3, 6144, %s217_s18, [#allocation8], %s3654_s20, %s3654_s20, %s3655_s21  }
  0x3b   : > { %s3656_s15 = smov [#allocation12]  }
  0x3c   : > { %s246_s16 = sshll.u32 %s3656_s15, 4  ;;  %s247_s16 = int_to_ptr.vmem [resolvable:$true] %s246_s16 }
  0x3d   : > { %s3531_s17 = scalar_lea.vmem %s247_s16, 128  ;;  %p3539_p3 = scmp.lt.s32.totalorder %s247_s16, %s247_s16 }
  0x3e   : > { %p3532_p6 = scmp.ne.s32.totalorder %s247_s16, %s3531_s17  ;;  %p3540_p10 = scmp.lt.s32.totalorder %s3531_s17, %s3531_s17 }
  0x40   : > { %p3534_p0 = pnand %p3532_p6, %p3444_p12  ;;  %p3541_p4 = por %p3540_p10, %p3539_p3 }
  0x42   : > { %p3535_p5 = pneg %p3534_p0 }
  0x44   : > { %p3542_p7 = pnand %p3541_p4, %p3535_p5 }
  0x46   : > { %3545 = shalt.err (!%p3542_p7)
}
  0x47   : > { %3208 = dma.hbm_to_vmem [thread:$0]  (!%p3761_p11), %s4325_s6, 128, %s247_s16, [#allocation11]  }
  0x48   : > { %s3800_s18 = sadd.s32 1, %s3648_s30   ;;  %s36_s20 = sadd.s32 1, %s3644_s29 }
  0x49   : > { %s33_s14 = ssub.s32 %s3648_s30, %s3800_s18  ;;  %p43_p12 = scmp.ne.s32.totalorder %s3644_s29, %s3640_s28 }
  0x4a   : > { %p34_p1 = scmp.eq.s32.totalorder %s33_s14, 0  ;;  %p44_p9 = scmp.eq.s32.totalorder %s3648_s30, 0 }
  0x4b   : > { %p4337_p13 = scmp.eq.s32.totalorder %s3733_s0, 1  ;;  %p3221_p6 = scmp.lt.s32.totalorder %s3648_s30, 2 }
  0x4c   : > { %s3816_s23 = scalar_select %p34_p1, %s3644_s29, %s36_s20  }
  0x4d   : > { %p3810_p2 = por %p4337_p13, %p43_p12  ;;  %p45_p0 = por %p44_p9, %p43_p12 }
  0x4e   : > { %s257_s24 = sand.u32 1, %s3644_s29   ;;  %s2914_s26 = sshll.u32 %s3648_s30, 8 }
  0x4f   : > { %s4338_s21 = scalar_select %p3810_p2, 1, 0 }
  0x50   : > { %s2754_s25 = sshll.u32 %s257_s24, 4  ;;  %s3823_s13 = scalar_lea.hbm %s4320_s1, %s2914_s26 }
  0x51   : > { %s261_s15 = scalar_lea.vmem [#allocation4], %s2754_s25  ;;  %p3827_p11 = pnand %p3221_p6, %p45_p0 }
  0x52   : > { %s268_s16 = sshll.u32 %s261_s15, 4  ;;  %s3831_s19 = scalar_lea.sflag [#allocation5], %s257_s24  ;;  %s3825_s16 = int_to_ptr.vmem [resolvable:$true] %s268_s16 }
  0x53   : > { %s3546_s22 = scalar_lea.hbm %s3823_s13, 256  ;;  %p3548_p3 = pneg %p3827_p11 }
  0x54   : > { %p3547_p5 = scmp.ne.s32.totalorder %s3823_s13, %s3546_s22  ;;  %s3551_s25 = scalar_lea.hbm %s4320_s1, 512 }
  0x55   : > { %p3552_p7 = scmp.lt.s32.totalorder %s3823_s13, %s4320_s1  ;;  %p3553_p12 = scmp.lt.s32.totalorder %s3551_s25, %s3546_s22 }
  0x56   : > { %p3549_p10 = pnand %p3548_p3, %p3547_p5 }
  0x57   : > { %p3554_p1 = por %p3553_p12, %p3552_p7 }
  0x58   : > { %p3550_p4 = pneg %p3549_p10 }
  0x5a   : > { %p3555_p9 = pnand %p3554_p1, %p3550_p4 }
  0x5c   : > { %3558 = shalt.err (!%p3555_p9)
}
  0x5d   : > { %s3559_s24 = scalar_lea.vmem %s3825_s16, 256  ;;  %s3657_s12 = smov [#allocation4]  }
  0x5e   : > { %p3560_p13 = scmp.ne.s32.totalorder %s3825_s16, %s3559_s24  ;;  %s3564_s15 = sshll.u32 %s3657_s12, 4  ;;  %s3565_s15 = int_to_ptr.vmem [resolvable:$false] %s3564_s15 }
  0x5f   : > { %s3566_s20 = scalar_lea.vmem %s3565_s15, 512  ;;  %p3567_p5 = scmp.lt.s32.totalorder %s3825_s16, %s3565_s15 }
  0x60   : > { %p3562_p6 = pnand %p3560_p13, %p3548_p3  ;;  %p3568_p10 = scmp.lt.s32.totalorder %s3566_s20, %s3559_s24 }
  0x62   : > { %p3563_p0 = pneg %p3562_p6  ;;  %p3569_p2 = por %p3568_p10, %p3567_p5 }
  0x64   : > { %p3570_p8 = pnand %p3569_p2, %p3563_p0 }
  0x66   : > { %3573 = shalt.err (!%p3570_p8)
}
  0x67   : > { %s3658_s22 = smov 128   ;;  %s3659_s14 = smov 8  }
  0x68   : > { %3212 = dma.hbm_to_vmem [thread:$0]  (!%p3827_p11), %s3823_s13, 256, %s3825_s16, %s3831_s19, %s3658_s22, %s3658_s22, %s3659_s14  }
  0x69   : > { %p4340_p3 = scmp.ne.s32.totalorder %s4335_s11, 0 }
  0x6a   : > { %s3855_s25 = sand.u32 (!%p4340_p3), 1, %s3640_s28   ;;  %p4341_p8 = scmp.ne.s32.totalorder (!%p4340_p3), %s4333_s9, 0 }
  0x6b   : > { %280 = sbr.rel (%p4340_p3) target bundleno = 2880 (0xb40), region = 44  ;;  %s2758_s26 = sshll.u32 (!%p4340_p3), %s3855_s25, 4 }
  0x6c   : > { %s283_s8 = scalar_lea.sflag (!%p4340_p3), [#allocation5], %s3855_s25  ;;  %s286_s24 = scalar_lea.vmem (!%p4340_p3), [#allocation4], %s2758_s26 }
  0x70   : > { %3619 = dma.done.wait (%p4341_p8), %s283_s8, 256  }
  0x71   : > { %3621 = vsyncadd (%p4341_p8), %s283_s8, 4294967040  ;;  %p4342_p2 = scmp.eq.s32.totalorder %s3733_s0, 0 }
  0x73   : > { %3623 = dma.done.wait (%p4342_p2), [#allocation8], 7168   ;;  %p4343_p11 = pmov %p4342_p2 }
  0x74   : > { %p4344_p4 = pmov %p4342_p2 }
  0x75   : > { %3625 = vsyncadd (%p4343_p11), [#allocation8], 4294960128 }
  0x76   : > { %3627 = dma.done.wait (%p4344_p4), [#allocation11], 6272   ;;  %p4345_p7 = pmov %p4342_p2 }
  0x77   : > { %vm4331_vm0 = vcmask 1041408   ;;  %v334_v0 = vld [vmem:[%s286_s24 + $0x8] sm:$0xff]  ;;  %v333_v1 = vld [vmem:[%s286_s24] sm:$0xff]  ;;  %vm4332_vm1 = vcmask 1045504   ;;  %vm348_vm2 = vcmask 1046528   ;;  %vm378_vm3 = vcmask 1044480  }
  0x78   : > { %3629 = vsyncadd (%p4345_p7), [#allocation11], 4294961024  ;;  %v339_v2 = vrot.slane %v334_v0, 6  ;;  %v338_v3 = vrot.slane %v333_v1, 6  ;;  %v3298_v4 = vld [vmem:[#allocation7 + $0x38] sm:$0xff]   ;;  %v3299_v5 = vld [vmem:[#allocation7 + $0x30] sm:$0xff]   ;;  %v519_v56 = vlaneseq }
  0x79   : > { %3111 = vmatprep.subr.bf16.mxu0 %v3298_v4  ;;  %v3300_v9 = vld [vmem:[#allocation7 + $0x28] sm:$0xff]   ;;  %s3660_s9 = smov 64   ;;  %s3661_s11 = smov 32   ;;  %v3301_v27 = vld [vmem:[#allocation7 + $0x20] sm:$0xff]   ;;  %v3302_v29 = vld [vmem:[#allocation7 + $0x18] sm:$0xff]   ;;  %vm393_vm4 = vcmask 261120  }
  0x7a   : > { %v345_v6 = vsel %vm4331_vm0, %v339_v2, 0.0  ;;  %v3873_v7 = vsel %vm4331_vm0, %v338_v3, %v339_v2  ;;  %v3876_v8 = vsel %vm4331_vm0, 0.0, %v338_v3  ;;  %3112 = vmatpush3.bf16.msra.mxu0 %v3298_v4  ;;  %s3662_s13 = smov 96   ;;  %v3303_v30 = vld [vmem:[#allocation7 + $0x10] sm:$0xff]   ;;  %v3304_v31 = vld [vmem:[#allocation7 + $0x8] sm:$0xff]   ;;  %v3305_v32 = vld [vmem:[#allocation7] sm:$0xff]  }
  0x7b   : > { %v367_v10 = vrot.slane %v345_v6, 2  ;;  %v352_v11 = vrot.slane %v345_v6, 1  ;;  %v364_v12 = vrot.slane %v3876_v8, 2  ;;  %v365_v13 = vrot.slane %v3873_v7, 2  ;;  %3113 = vmatprep.subr.bf16.mxu0 %v3299_v5  ;;  %s332_s16 = sld [smem:[#allocation3 + %s3733_s0]]  ;;  %s2763_s12 = sshll.u32 %s3855_s25, 3 }
  0x7c   : > { %v349_v14 = vrot.slane %v3876_v8, 1  ;;  %v350_v15 = vrot.slane %v3873_v7, 1  ;;  %v382_v16 = vrot.slane %v345_v6, 3  ;;  %v379_v17 = vrot.slane %v3876_v8, 3  ;;  %s2911_s15 = sshll.u32 %s3733_s0, 7  ;;  %s330_s20 = scalar_lea.vmem [#allocation13], %s2763_s12 }
  0x7d   : > { %373 = vrot.lane.b32.xlu1 %v367_v10, %s3660_s9  ;;  %358 = vrot.lane.b32.xlu0 %v352_v11, %s3661_s11  ;;  %v366_v18 = vsel %vm4332_vm1, %v364_v12, %v365_v13  ;;  %v368_v19 = vsel %vm4332_vm1, %v365_v13, %v367_v10  ;;  %v380_v20 = vrot.slane %v3873_v7, 3  ;;  %vm397_vm5 = vcmask 523264   ;;  %s2639_s22 = sshll.u32 %s330_s20, 4  ;;  %s4281_s8 = scalar_lea.hbm %s4326_s7, %s2911_s15  ;;  %s2640_s22 = int_to_ptr.vmem [resolvable:$true] %s2639_s22 }
  0x7e   : > { %v3281_v21 = vpack.i.bf16 %v368_v19, %v366_v18  ;;  %v351_v22 = vsel %vm348_vm2, %v349_v14, %v350_v15  ;;  %v353_v23 = vsel %vm348_vm2, %v350_v15, %v352_v11  ;;  %3114 = vmatpush3.bf16.msra.mxu0 %v3299_v5  ;;  %vm401_vm6 = vcmask 785408   ;;  %s2626_s24 = scalar_lea.sflag [#allocation6], %s3855_s25  ;;  %p4355_p1 = scmp.ne.s32.totalorder %s4338_s21, 0 }
  0x7f   : > { %v3276_v24 = vpack.i.bf16 %v353_v23, %v351_v22  ;;  %v381_v25 = vsel %vm378_vm3, %v379_v17, %v380_v20  ;;  %v383_v26 = vsel %vm378_vm3, %v380_v20, %v382_v16  ;;  %3115 = vmatprep.subr.bf16.mxu0 %v3300_v9  ;;  %v3892_v57 = vand.u32 127, %v519_v56  ;;  %s3668_s0 = smov [#allocation13]  }
  0x80   : > { %v3286_v28 = vpack.i.bf16 %v383_v26, %v381_v25  ;;  %vm537_vm8 = vcmask 1040384   ;;  %vm3664_vm15 = vmmov 0   ;;  %vm618_vm0 = vcmask 138240  }
  0x81   : > { %3282 = vrot.lane.b32.xlu1 %v3281_v21, %s3660_s9  ;;  %3277 = vrot.lane.b32.xlu0 %v3276_v24, %s3661_s11  ;;  %vm529_vm7 = vcmp.lt.s32.totalorder %v3892_v57, 16  ;;  %vm715_vm1 = vcmask 0   ;;  %s3574_s9 = scalar_lea.vmem %s2640_s22, 128  ;;  %s3578_s11 = sshll.u32 %s3668_s0, 4  ;;  %s3579_s11 = int_to_ptr.vmem [resolvable:$false] %s3578_s11 }
  0x82   : > { %3116 = vmatpush3.bf16.msra.mxu0 %v3300_v9  ;;  %p3575_p12 = scmp.ne.s32.totalorder %s2640_s22, %s3574_s9  ;;  %p3581_p6 = scmp.lt.s32.totalorder %s2640_s22, %s3579_s11 }
  0x83   : > { %3117 = vmatprep.subr.bf16.mxu0 %v3301_v27 }
  0x84   : > { %p3576_p9 = pnand %p3575_p12, %p4355_p1 }
  0x85   : > { %388 = vrot.lane.b32.xlu1 %v382_v16, %s3662_s13  ;;  %3287 = vrot.lane.b32.xlu0 %v3286_v28, %s3662_s13  ;;  %v3919_v28 = vshrl.u32 %v519_v56, 7  ;;  %v3665_v56 = vmov 1.0   ;;  %s3580_s13 = scalar_lea.vmem %s3579_s11, 256 }
  0x86   : > { %3118 = vmatpush3.bf16.msra.mxu0 %v3301_v27  ;;  %v3663_v27 = vmov 0.0   ;;  %p3577_p13 = pneg %p3576_p9  ;;  %p3582_p0 = scmp.lt.s32.totalorder %s3580_s13, %s3574_s9 }
  0x87   : > { %3119 = vmatprep.subr.bf16.mxu0 %v3302_v29  ;;  %3131 = vmatprep.subr.mxu1 %v3663_v27 }
  0x88   : > { %3137 = vmatprep.mubr.msk.f32.mxu1 %vm3664_vm15, %v3663_v27  ;;  %p3583_p5 = por %p3582_p0, %p3581_p6 }
  0x8a   : > { %3120 = vmatpush3.bf16.msra.mxu0 %v3302_v29  ;;  %p3584_p10 = pnand %p3583_p5, %p3577_p13 }
  0x8b   : > { %3121 = vmatprep.subr.bf16.mxu0 %v3303_v30 }
  0x8e   : > { %3122 = vmatpush3.bf16.msra.mxu0 %v3303_v30  ;;  %v3922_v30 = vadd.s32 8, %v3919_v28 }
  0x8f   : > { %3123 = vmatprep.subr.bf16.mxu0 %v3304_v31 }
  0x92   : > { %3124 = vmatpush3.bf16.msra.mxu0 %v3304_v31  ;;  %v3924_v31 = vstv %s332_s16 }
  0x93   : > { %3125 = vmatprep.subr.bf16.mxu0 %v3305_v32 }
  0x96   : > { %3126 = vmatpush3.bf16.msra.mxu0 %v3305_v32 }
  0xef   : > { %v374_v33 = vpop.permute.xlu1 %373  ;;  %v359_v34 = vpop.permute.xlu0 %358 }
  0xf0   : > { %v396_v39 = vsel %vm393_vm4, %v345_v6, %v359_v34 }
  0xf1   : > { %v400_v46 = vsel %vm397_vm5, %v396_v39, %v374_v33 }
  0xf3   : > { %v3283_v35 = vpop.permute.xlu1 %3282  ;;  %v3278_v36 = vpop.permute.xlu0 %3277 }
  0xf4   : > { %v3280_v37 = vunpack.i.h.bf16 %v3278_v36  ;;  %v3279_v38 = vunpack.i.l.bf16 %v3278_v36  ;;  %v3285_v40 = vunpack.i.h.bf16 %v3283_v35  ;;  %v3284_v41 = vunpack.i.l.bf16 %v3283_v35 }
  0xf6   : > { %v394_v42 = vsel %vm393_vm4, %v3876_v8, %v3279_v38  ;;  %v395_v43 = vsel %vm393_vm4, %v3873_v7, %v3280_v37  ;;  %vm525_vm4 = vcmp.lt.s32.totalorder %v3922_v30, %v3924_v31  ;;  %v3929_v37 = vadd.s32 16, %v3919_v28 }
  0xf7   : > { %v389_v44 = vpop.permute.xlu1 %388  ;;  %v3288_v45 = vpop.permute.xlu0 %3287  ;;  %v398_v50 = vsel %vm397_vm5, %v394_v42, %v3284_v41  ;;  %v399_v51 = vsel %vm397_vm5, %v395_v43, %v3285_v40 }
  0xf8   : > { %v3290_v47 = vunpack.i.h.bf16 %v3288_v45  ;;  %v3289_v48 = vunpack.i.l.bf16 %v3288_v45  ;;  %v404_v49 = vsel %vm401_vm6, %v400_v46, %v389_v44  ;;  %vm526_vm5 = vcmp.lt.s32.totalorder %v3929_v37, %v3924_v31 }
  0xf9   : > { %v406_v55 = vpack.c.bf16 %v404_v49, %v404_v49 }
  0xfa   : > { %v402_v52 = vsel %vm401_vm6, %v398_v50, %v3289_v48  ;;  %v403_v53 = vsel %vm401_vm6, %v399_v51, %v3290_v47  ;;  %vm524_vm6 = vcmp.lt.s32.totalorder %v3919_v28, %v3924_v31 }
  0xfb   : > { %v405_v54 = vpack.c.bf16 %v403_v53, %v402_v52 }
  0xfd   : > { %3127 = vmatprep.mubr.bf16.mxu0 %v405_v54 }
  0xfe   : > { %3128 = vmatmul.mubr.bf16.vlgmr.msra.gmra.mxu0 %v406_v55 }
 0x1be   : > { %v3895_v58 = vpop.f32.mrf.mxu0 }
 0x1bf   : > { %v532_v59 = vsel %vm529_vm7, %v3895_v58, -1e+30 }
 0x1c0   : > { %v3900_v60 = vpop.f32.mrf.mxu0  ;;  %v538_v61 = vsel %vm537_vm8, %v532_v59, -inf }
 0x1c1   : > { %539 = vmax.xlane.f32.xlu1 %v538_v61  ;;  %v530_v1 = vsel %vm529_vm7, %v3900_v60, -1e+30 }
 0x1c2   : > { %v3130_v62 = vpop.f32.mrf.mxu0 }
 0x1c4   : > { %v3903_v63 = vpop.f32.mrf.mxu0 }
 0x1c5   : > { %v531_v0 = vsel %vm529_vm7, %v3903_v63, -1e+30 }
 0x1c6   : > { %535 = vmax.xlane.f32.xlu0 %v531_v0 }
 0x1ca   : > { %533 = vmax.xlane.f32.xlu0 %v530_v1 }
 0x24a   : > { %v540_v2 = vpop.xlane.xlu1 %539 }
 0x24b   : > { %vm543_vm9 = vcmp.eq.f32.partialorder %v532_v59, %v540_v2 }
 0x24c   : > { %v546_v3 = vsel %vm543_vm9, %v3892_v57, 128 }
 0x24d   : > { %v575_v5 = vsel %vm537_vm8, %v546_v3, 2147483647 }
 0x24e   : > { %v577_v10 = vshra.s32 %v575_v5, 16  ;;  %v576_v19 = vand.u32 65535, %v575_v5  ;;  %v3666_v5 = vmov 0  }
 0x24f   : > { %v536_v4 = vpop.xlane.xlu0 %535  ;;  %3291 = vset.pattern.permute.xlu0 %v3666_v5  ;;  %3292 = vset.pattern.permute.xlu1 %v3666_v5 }
 0x250   : > { %vm542_vm10 = vcmp.eq.f32.partialorder %v531_v0, %v536_v4  ;;  %v579_v13 = vcvt.s32.f32 %v577_v10  ;;  %v578_v24 = vcvt.s32.f32 %v576_v19 }
 0x251   : > { %v545_v6 = vsel %vm542_vm10, %v3892_v57, 128 }
 0x252   : > { %v562_v7 = vshra.s32 %v545_v6, 16  ;;  %v561_v15 = vand.u32 65535, %v545_v6 }
 0x253   : > { %v534_v8 = vpop.xlane.xlu0 %533 }
 0x254   : > { %vm541_vm11 = vcmp.eq.f32.partialorder %v530_v1, %v534_v8  ;;  %v564_v9 = vcvt.s32.f32 %v562_v7  ;;  %v563_v18 = vcvt.s32.f32 %v561_v15 }
 0x255   : > { %v544_v11 = vsel %vm541_vm11, %v3892_v57, 128  ;;  %vm609_vm11 = vcmp.ge.s32.totalorder %v3919_v28, %v3892_v57 }
 0x256   : > { %565 = vmin.xlane.f32.xlu0 %v564_v9  ;;  %v548_v12 = vshra.s32 %v544_v11, 16  ;;  %v547_v16 = vand.u32 65535, %v544_v11  ;;  %v2775_v59 = vsel %vm609_vm11, 1.0, %v3663_v27  ;;  %vm611_vm11 = vcmp.ge.s32.totalorder %v3929_v37, %v3892_v57 }
 0x258   : > { %v550_v14 = vcvt.s32.f32 %v548_v12  ;;  %v549_v23 = vcvt.s32.f32 %v547_v16  ;;  %v730_v16 = vcvt.s32.f32 %v3892_v57 }
 0x25a   : > { %580 = vmin.xlane.f32.xlu0 %v579_v13  ;;  %551 = vmin.xlane.f32.xlu1 %v550_v14 }
 0x2df   : > { %v566_v17 = vpop.xlane.xlu0 %565 }
 0x2e0   : > { %vm567_vm12 = vcmp.eq.f32.partialorder %v564_v9, %v566_v17  ;;  %v572_v29 = vcvt.f32.s32 %v566_v17 }
 0x2e1   : > { %v568_v20 = vsel %vm567_vm12, %v563_v18, inf }
 0x2e2   : > { %569 = vmin.xlane.f32.xlu1 %v568_v20  ;;  %v573_v34 = vshll.u32 %v572_v29, 16 }
 0x2e3   : > { %v552_v21 = vpop.xlane.xlu1 %551  ;;  %v581_v22 = vpop.xlane.xlu0 %580 }
 0x2e4   : > { %vm553_vm13 = vcmp.eq.f32.partialorder %v550_v14, %v552_v21  ;;  %vm582_vm14 = vcmp.eq.f32.partialorder %v579_v13, %v581_v22  ;;  %v558_v32 = vcvt.f32.s32 %v552_v21  ;;  %v587_v35 = vcvt.f32.s32 %v581_v22 }
 0x2e5   : > { %v554_v25 = vsel %vm553_vm13, %v549_v23, inf  ;;  %v583_v26 = vsel %vm582_vm14, %v578_v24, inf  ;;  %vm711_vm13 = vcmask 7168  }
 0x2e6   : > { %555 = vmin.xlane.f32.xlu0 %v554_v25  ;;  %584 = vmin.xlane.f32.xlu1 %v583_v26  ;;  %v559_v39 = vshll.u32 %v558_v32, 16  ;;  %v588_v42 = vshll.u32 %v587_v35, 16 }
 0x36b   : > { %v570_v33 = vpop.xlane.xlu1 %569 }
 0x36c   : > { %v571_v36 = vcvt.f32.s32 %v570_v33 }
 0x36e   : > { %v574_v38 = vadd.s32 %v573_v34, %v571_v36 }
 0x36f   : > { %v585_v40 = vpop.xlane.xlu1 %584  ;;  %v556_v41 = vpop.xlane.xlu0 %555 }
 0x370   : > { %v591_v43 = vsel %vm525_vm4, %v574_v38, 4294967295  ;;  %v586_v44 = vcvt.f32.s32 %v585_v40  ;;  %v557_v45 = vcvt.f32.s32 %v556_v41 }
 0x371   : > { %v594_v48 = vrot.slane %v591_v43, 7 }
 0x372   : > { %v589_v46 = vadd.s32 %v588_v42, %v586_v44  ;;  %v560_v47 = vadd.s32 %v559_v39, %v557_v45 }
 0x374   : > { %v592_v49 = vsel %vm526_vm5, %v589_v46, 4294967295  ;;  %v590_v50 = vsel %vm524_vm6, %v560_v47, 4294967295 }
 0x375   : > { %v593_v51 = vrot.slane %v590_v50, 7  ;;  %vm599_vm9 = vcmp.ne.s32.totalorder %v592_v49, %v594_v48 }
 0x376   : > { %vm602_vm10 = vmand %vm599_vm9, %vm526_vm5 }
 0x377   : > { %v2774_v52 = vsel %vm602_vm10, 1.0, %v3663_v27  ;;  %v595_v53 = vsel %vm537_vm8, %v593_v51, %v594_v48  ;;  %v596_v54 = vsel %vm537_vm8, 4294967294, %v593_v51 }
 0x378   : > { %3132 = vmatpush3.msk.msra.mxu1 %vm537_vm8, %v2774_v52  ;;  %vm598_vm12 = vcmp.ne.s32.totalorder %v591_v43, %v595_v53  ;;  %vm597_vm14 = vcmp.ne.s32.totalorder %v590_v50, %v596_v54  ;;  %v716_v2 = vsel %vm715_vm1, %v2774_v52, 0.0 }
 0x379   : > { %3133 = vmatprep.subr.mxu1 %v3663_v27  ;;  %vm601_vm9 = vmand %vm598_vm12, %vm525_vm4  ;;  %vm610_vm12 = vcmp.ge.s32.totalorder %v3922_v30, %v3892_v57 }
 0x37a   : > { %v2773_v55 = vsel %vm601_vm9, 1.0, %v3663_v27  ;;  %3134 = vmatpush3.msk.msra.mxu1 %vm601_vm9, %v3665_v56  ;;  %vm600_vm10 = vmand %vm597_vm14, %vm524_vm6  ;;  %v2776_v3 = vsel %vm610_vm12, 1.0, %v3663_v27  ;;  %vm4346_vm9 = vcmask 1045504   ;;  %vm3667_vm12 = vmmov 1  }
 0x37b   : > { %v713_v61 = vsel %vm711_vm13, %v2773_v55, 0.0  ;;  %3135 = vmatprep.subr.mxu1 %v3663_v27  ;;  %v2772_v62 = vsel %vm600_vm10, 1.0, %v3663_v27 }
 0x37c   : > { %3136 = vmatpush3.msk.msra.mxu1 %vm600_vm10, %v3665_v56  ;;  %v712_v0 = vsel %vm711_vm13, %v2772_v62, 0.0  ;;  %vm4347_vm10 = vmmov %vm4346_vm9 }
 0x37d   : > { %v714_v1 = vadd.f32 %v713_v61, %v712_v0  ;;  %3138 = vmatmul.mubr.msk.f32.vlgmr.msra.gmra.mxu1 %vm618_vm0, %v2775_v59  ;;  %3146 = vmatprep.subr.mxu1 %v3663_v27 }
 0x37e   : > { %3147 = vmatpush3.msk.msra.mxu1 %vm537_vm8, %v3895_v58  ;;  %3140 = vmatprep.mubr.msk.f32.mxu1 %vm3664_vm15, %v3663_v27  ;;  %v2777_v58 = vsel %vm611_vm11, 1.0, %v3663_v27 }
 0x37f   : > { %v3978_v4 = vadd.f32 %v716_v2, %v714_v1  ;;  %3148 = vmatprep.subr.mxu1 %v3663_v27 }
 0x380   : > { %3149 = vmatpush3.msra.mxu1 %v3903_v63 }
 0x381   : > { %3141 = vmatmul.mubr.msk.f32.gmra.mxu1 %vm618_vm0, %v2776_v3  ;;  %3150 = vmatprep.subr.mxu1 %v3663_v27 }
 0x382   : > { %3151 = vmatpush3.msra.mxu1 %v3900_v60  ;;  %3143 = vmatprep.mubr.msk.f32.mxu1 %vm3664_vm15, %v3663_v27 }
 0x383   : > { %3161 = vmatprep.subr.mxu1 %v3663_v27 }
 0x385   : > { %3144 = vmatmul.mubr.msk.f32.gmra.mxu1 %vm618_vm0, %v2777_v58 }
 0x386   : > { %3152 = vmatprep.mubr.msk.f32.mxu1 %vm3664_vm15, %v3663_v27 }
 0x43d   : > { %v697_v63 = vpop.f32.mrf.mxu1 }
 0x43e   : > { %v2784_v6 = vadd.f32 -1.0, %v697_v63 }
 0x43f   : > { %v3139_v7 = vpop.f32.mrf.mxu1 }
 0x440   : > { %v727_v60 = vsel %vm524_vm6, %v2784_v6, -1.0 }
 0x441   : > { %733 = vperm.xlu0 %3291, %v727_v60   ;;  %v702_v8 = vpop.f32.mrf.mxu1 }
 0x442   : > { %v2785_v9 = vadd.f32 -1.0, %v702_v8 }
 0x443   : > { %v3142_v10 = vpop.f32.mrf.mxu1 }
 0x444   : > { %v728_v11 = vsel %vm525_vm4, %v2785_v9, -1.0 }
 0x445   : > { %738 = vperm.xlu1 %3292, %v728_v11   ;;  %v707_v12 = vpop.f32.mrf.mxu1 }
 0x446   : > { %v2786_v13 = vadd.f32 -1.0, %v707_v12 }
 0x447   : > { %v3145_v14 = vpop.f32.mrf.mxu1 }
 0x448   : > { %v729_v15 = vsel %vm526_vm5, %v2786_v13, -1.0  ;;  %vm2854_vm5 = vmneg %vm378_vm3 }
 0x449   : > { %743 = vperm.xlu1 %3292, %v729_v15   ;;  %vm4111_vm11 = vmpackc.low %vm3667_vm12, %vm2854_vm5 }
 0x4bc   : > { %v734_v17 = vpop.permute.xlu0 %733 }
 0x4bd   : > { %vm746_vm6 = vcmp.eq.f32.partialorder %v734_v17, %v730_v16 }
 0x4be   : > { %v2787_v18 = vsel %vm746_vm6, 1.0, %v3663_v27  ;;  %vm1212_vm6 = vcmask 1042432  }
 0x4bf   : > { %755 = vxpose.xlu1.b32.start [1/3] (short) (narrow) %v2787_v18, 24 }
 0x4c0   : > { %v739_v19 = vpop.permute.xlu1 %738 }
 0x4c1   : > { %vm747_vm14 = vcmp.eq.f32.partialorder %v739_v19, %v730_v16 }
 0x4c2   : > { %v2788_v20 = vsel %vm747_vm14, 1.0, %v3663_v27  ;;  %vm1203_vm14 = vcmask 1043456  }
 0x4c3   : > { %756 = vxpose.xlu1.b32.cont [2/3] (short) (narrow) %v2788_v20, 24 }
 0x4c4   : > { %v744_v21 = vpop.permute.xlu1 %743 }
 0x4c5   : > { %vm748_vm4 = vcmp.eq.f32.partialorder %v744_v21, %v730_v16 }
 0x4c6   : > { %v2789_v22 = vsel %vm748_vm4, 1.0, %v3663_v27  ;;  %vm4350_vm4 = vmmov %vm4346_vm9 }
 0x4c7   : > { %757 = vxpose.xlu1.b32.end [3/3] (short) (narrow) %v2789_v22, 24 }
 0x53b   : > { %v771_v23 = vpop.trf.xlu1 }
 0x53c   : > { %3153 = vmatmul.mubr.msk.f32.vlgmr.msra.gmra.mxu1 %vm618_vm0, %v771_v23 }
 0x53d   : > { %3162 = vmatpush3.msk.msra.mxu1 %vm537_vm8, %v3665_v56  ;;  %3155 = vmatprep.mubr.msk.f32.mxu1 %vm3664_vm15, %v3663_v27 }
 0x53e   : > { %3163 = vmatprep.subr.mxu1 %v3663_v27 }
 0x53f   : > { %v772_v24 = vpop.trf.xlu1  ;;  %3164 = vmatpush3.msra.mxu1 %v3665_v56 }
 0x540   : > { %3156 = vmatmul.mubr.msk.f32.gmra.mxu1 %vm618_vm0, %v772_v24  ;;  %3165 = vmatprep.subr.mxu1 %v3663_v27 }
 0x541   : > { %3158 = vmatprep.mubr.msk.f32.mxu1 %vm3664_vm15, %v3663_v27  ;;  %3166 = vmatpush3.msra.mxu1 %v3665_v56 }
 0x543   : > { %v773_v25 = vpop.trf.xlu1 }
 0x544   : > { %3159 = vmatmul.mubr.msk.f32.gmra.mxu1 %vm618_vm0, %v773_v25 }
 0x545   : > { %3167 = vmatprep.mubr.msk.f32.mxu1 %vm3664_vm15, %v3663_v27 }
 0x548   : > { %3168 = vmatmul.mubr.msk.f32.vlgmr.msra.gmra.mxu1 %vm618_vm0, %v771_v23  ;;  %v3306_v23 = vld [vmem:[#allocation9 + $0x78] sm:$0xff]  }
 0x549   : > { %3170 = vmatprep.mubr.msk.f32.mxu1 %vm3664_vm15, %v3663_v27  ;;  %2943 = vmatprep.subr.bf16.mxu1 %v3306_v23 }
 0x54c   : > { %3171 = vmatmul.mubr.msk.f32.gmra.mxu1 %vm618_vm0, %v772_v24 }
 0x54d   : > { %3173 = vmatprep.mubr.msk.f32.mxu1 %vm3664_vm15, %v3663_v27 }
 0x550   : > { %3174 = vmatmul.mubr.msk.f32.gmra.mxu1 %vm618_vm0, %v773_v25 }
 0x5fc   : > { %v865_v26 = vpop.f32.mrf.mxu1 }
 0x5fe   : > { %v3154_v29 = vpop.f32.mrf.mxu1 }
 0x5ff   : > { %v3308_v29 = vld [vmem:[#allocation9 + $0xf8] sm:$0xff]  }
 0x600   : > { %v870_v31 = vpop.f32.mrf.mxu1  ;;  %2971 = vmatprep.subr.bf16.mxu0 %v3308_v29 }
 0x602   : > { %v3157_v32 = vpop.f32.mrf.mxu1 }
 0x603   : > { %v3310_v32 = vld [vmem:[#allocation9 + $0x70] sm:$0xff]  }
 0x604   : > { %v875_v33 = vpop.f32.mrf.mxu1 }
 0x606   : > { %v3160_v34 = vpop.f32.mrf.mxu1 }
 0x607   : > { %v3311_v34 = vld [vmem:[#allocation9 + $0x30] sm:$0xff]  }
 0x608   : > { %v948_v35 = vpop.f32.mrf.mxu1 }
 0x609   : > { %v962_v36 = vmax.f32 %v948_v35, 1.0  ;;  %v3312_v35 = vld [vmem:[#allocation9 + $0xf0] sm:$0xff]  }
 0x60a   : > { %v3169_v38 = vpop.f32.mrf.mxu1 }
 0x60b   : > { %967 = vperm.xlu0 %3291, %v962_v36   ;;  %v3313_v36 = vld [vmem:[#allocation9 + $0xb0] sm:$0xff]   ;;  %v3314_v38 = vld [vmem:[#allocation9 + $0x68] sm:$0xff]  }
 0x60c   : > { %v953_v39 = vpop.f32.mrf.mxu1 }
 0x60d   : > { %v963_v44 = vmax.f32 %v953_v39, 1.0  ;;  %v3315_v39 = vld [vmem:[#allocation9 + $0x28] sm:$0xff]  }
 0x60e   : > { %v3172_v40 = vpop.f32.mrf.mxu1 }
 0x60f   : > { %v3316_v40 = vld [vmem:[#allocation9 + $0xe8] sm:$0xff]  }
 0x610   : > { %v958_v41 = vpop.f32.mrf.mxu1 }
 0x611   : > { %v964_v42 = vmax.f32 %v958_v41, 1.0  ;;  %v3317_v41 = vld [vmem:[#allocation9 + $0xa8] sm:$0xff]  }
 0x612   : > { %v3175_v43 = vpop.f32.mrf.mxu1 }
 0x613   : > { %977 = vperm.xlu0 %3291, %v964_v42   ;;  %v3318_v42 = vld [vmem:[#allocation9 + $0x60] sm:$0xff]  }
 0x614   : > { %v3319_v43 = vld [vmem:[#allocation9 + $0x20] sm:$0xff]  }
 0x617   : > { %972 = vperm.xlu0 %3291, %v963_v44   ;;  %v3320_v44 = vld [vmem:[#allocation9 + $0xe0] sm:$0xff]  }
 0x686   : > { %v968_v45 = vpop.permute.xlu0 %967 }
 0x687   : > { %3402 = vrcp.f32 %v968_v45  ;;  %v3321_v45 = vld [vmem:[#allocation9 + $0xa0] sm:$0xff]  }
 0x68e   : > { %v978_v46 = vpop.permute.xlu0 %977 }
 0x68f   : > { %3404 = vrcp.f32 %v978_v46  ;;  %v3322_v46 = vld [vmem:[#allocation9 + $0x58] sm:$0xff]  }
 0x692   : > { %v973_v47 = vpop.permute.xlu0 %972 }
 0x693   : > { %3406 = vrcp.f32 %v973_v47  ;;  %v3323_v47 = vld [vmem:[#allocation9 + $0x18] sm:$0xff]  }
 0x694   : > { %v3403_v48 = vpop.eup %3402 }
 0x695   : > { %v981_v49 = vmul.f32 %v3403_v48, %v865_v26  ;;  %v3307_v26 = vld [vmem:[#allocation9 + $0x38] sm:$0xff]  }
 0x696   : > { %2944 = vmatpush3.bf16.msra.mxu1 %v3307_v26  ;;  %v3324_v48 = vld [vmem:[#allocation9 + $0xd8] sm:$0xff]  }
 0x697   : > { %v986_v50 = vsel %vm529_vm7, %v981_v49, -1e+30  ;;  %v1130_v0 = vrot.slane %v981_v49, 1  ;;  %2945 = vmatprep.subr.bf16.mxu1 %v3310_v32 }
 0x698   : > { %989 = vmax.xlane.f32.xlu1 %v986_v50 }
 0x69a   : > { %2946 = vmatpush3.bf16.msra.mxu1 %v3311_v34 }
 0x69b   : > { %2947 = vmatprep.subr.bf16.mxu1 %v3314_v38 }
 0x69c   : > { %v3405_v51 = vpop.eup %3404 }
 0x69d   : > { %v985_v52 = vmul.f32 %v3405_v51, %v875_v33  ;;  %v3327_v51 = vld [vmem:[#allocation9 + $0x10] sm:$0xff]  }
 0x69e   : > { %2948 = vmatpush3.bf16.msra.mxu1 %v3315_v39 }
 0x69f   : > { %v988_v53 = vsel %vm529_vm7, %v985_v52, -1e+30  ;;  %v1133_v59 = vrot.slane %v985_v52, 1  ;;  %2949 = vmatprep.subr.bf16.mxu1 %v3318_v42  ;;  %v3328_v52 = vld [vmem:[#allocation9 + $0xd0] sm:$0xff]  }
 0x6a0   : > { %v3407_v54 = vpop.eup %3406  ;;  %v993_v55 = vsel %vm537_vm8, %v988_v53, -inf }
 0x6a1   : > { %994 = vmax.xlane.f32.xlu0 %v993_v55  ;;  %v983_v56 = vmul.f32 %v3407_v54, %v870_v31  ;;  %v3309_v31 = vld [vmem:[#allocation9 + $0xb8] sm:$0xff]   ;;  %v3330_v54 = vld [vmem:[#allocation9 + $0x48] sm:$0xff]  }
 0x6a2   : > { %2972 = vmatpush3.bf16.msra.mxu0 %v3309_v31  ;;  %2950 = vmatpush3.bf16.msra.mxu1 %v3319_v43  ;;  %v3331_v55 = vld [vmem:[#allocation9 + $0x8] sm:$0xff]  }
 0x6a3   : > { %v987_v61 = vsel %vm529_vm7, %v983_v56, -1e+30  ;;  %v1131_v62 = vrot.slane %v983_v56, 1  ;;  %2973 = vmatprep.subr.bf16.mxu0 %v3312_v35  ;;  %2951 = vmatprep.subr.bf16.mxu1 %v3322_v46 }
 0x6a5   : > { %991 = vmax.xlane.f32.xlu0 %v987_v61  ;;  %v1134_v1 = vsel %vm348_vm2, %v1131_v62, %v1133_v59  ;;  %v1132_v2 = vsel %vm348_vm2, %v1130_v0, %v1131_v62  ;;  %v3333_v59 = vld [vmem:[#allocation9 + $0x88] sm:$0xff]   ;;  %v3336_v62 = vld [vmem:[#allocation9 + $0xc0] sm:$0xff]  }
 0x6a6   : > { %v4038_v3 = vsub.f32 %v983_v56, %v1134_v1  ;;  %v4040_v58 = vsub.f32 %v981_v49, %v1132_v2  ;;  %2974 = vmatpush3.bf16.msra.mxu0 %v3313_v36  ;;  %v3325_v49 = vld [vmem:[#allocation9 + $0x98] sm:$0xff]   ;;  %2952 = vmatpush3.bf16.msra.mxu1 %v3323_v47  ;;  %v3332_v56 = vld [vmem:[#allocation9 + $0xc8] sm:$0xff]   ;;  %v3335_v0 = vld [vmem:[#allocation9] sm:$0xff]  }
 0x6a7   : > { %2975 = vmatprep.subr.bf16.mxu0 %v3316_v40  ;;  %v3337_v1 = vld [vmem:[#allocation9 + $0x80] sm:$0xff]   ;;  %v3338_v2 = vld [vmem:[#allocation9 + $0x178] sm:$0xff]  }
 0x6a8   : > { %v3339_v47 = vld [vmem:[#allocation9 + $0x138] sm:$0xff]  }
 0x6aa   : > { %2976 = vmatpush3.bf16.msra.mxu0 %v3317_v41 }
 0x6ab   : > { %2977 = vmatprep.subr.bf16.mxu0 %v3320_v44 }
 0x6ae   : > { %2978 = vmatpush3.bf16.msra.mxu0 %v3321_v45 }
 0x6af   : > { %2979 = vmatprep.subr.bf16.mxu0 %v3324_v48 }
 0x6b2   : > { %2980 = vmatpush3.bf16.msra.mxu0 %v3325_v49  ;;  %v3340_v49 = vld [vmem:[#allocation9 + $0x170] sm:$0xff]  }
 0x6b3   : > { %2981 = vmatprep.subr.bf16.mxu0 %v3328_v52 }
 0x721   : > { %v990_v5 = vpop.xlane.xlu1 %989 }
 0x722   : > { %v996_v63 = vsub.f32 %v986_v50, %v990_v5  ;;  %vm1018_vm7 = vcmp.eq.f32.partialorder %v986_v50, %v990_v5  ;;  %v3326_v50 = vld [vmem:[#allocation9 + $0x50] sm:$0xff]  }
 0x723   : > { %v4056_v18 = vsel %vm1018_vm7, %v3892_v57, 128  ;;  %2953 = vmatprep.subr.bf16.mxu1 %v3326_v50 }
 0x724   : > { %v999_v6 = vmul.f32 1.442695, %v996_v63  ;;  %v1025_v20 = vshra.s32 %v4056_v18, 16  ;;  %2954 = vmatpush3.bf16.msra.mxu1 %v3327_v51 }
 0x725   : > { %2955 = vmatprep.subr.bf16.mxu1 %v3330_v54  ;;  %v3342_v54 = vld [vmem:[#allocation9 + $0x168] sm:$0xff]  }
 0x726   : > { %3408 = vpow2.f32 %v999_v6  ;;  %v4067_v24 = vcvt.s32.f32 %v1025_v20 }
 0x728   : > { %2956 = vmatpush3.bf16.msra.mxu1 %v3331_v55 }
 0x72a   : > { %v995_v7 = vpop.xlane.xlu0 %994 }
 0x72b   : > { %vm1020_vm0 = vcmp.eq.f32.partialorder %v988_v53, %v995_v7  ;;  %v998_v60 = vsub.f32 %v988_v53, %v995_v7  ;;  %v3329_v53 = vld [vmem:[#allocation9 + $0x90] sm:$0xff]  }
 0x72c   : > { %v1023_v8 = vsel %vm1020_vm0, %v3892_v57, 128  ;;  %2982 = vmatpush3.bf16.msra.mxu0 %v3329_v53  ;;  %v3341_v53 = vld [vmem:[#allocation9 + $0x130] sm:$0xff]   ;;  %vm4351_vm0 = vmmov %vm4350_vm4 }
 0x72d   : > { %v4044_v9 = vsel %vm537_vm8, %v1023_v8, 2147483647  ;;  %v1003_v13 = vmul.f32 1.442695, %v998_v60  ;;  %2983 = vmatprep.subr.bf16.mxu0 %v3332_v56 }
 0x72e   : > { %v992_v10 = vpop.xlane.xlu0 %991  ;;  %v1054_v11 = vshra.s32 %v4044_v9, 16 }
 0x72f   : > { %v997_v12 = vsub.f32 %v987_v61, %v992_v10  ;;  %vm1019_vm15 = vcmp.eq.f32.partialorder %v987_v61, %v992_v10  ;;  %v3334_v61 = vld [vmem:[#allocation9 + $0x40] sm:$0xff]  }
 0x730   : > { %v4047_v14 = vcvt.s32.f32 %v1054_v11  ;;  %v4063_v21 = vsel %vm1019_vm15, %v3892_v57, 128  ;;  %2957 = vmatprep.subr.bf16.mxu1 %v3334_v61  ;;  %2984 = vmatpush3.bf16.msra.mxu0 %v3333_v59  ;;  %v3343_v61 = vld [vmem:[#allocation9 + $0x128] sm:$0xff]  }
 0x731   : > { %v1001_v15 = vmul.f32 1.442695, %v997_v12  ;;  %v1039_v25 = vshra.s32 %v4063_v21, 16  ;;  %2985 = vmatprep.subr.bf16.mxu0 %v3336_v62  ;;  %2958 = vmatpush3.bf16.msra.mxu1 %v3335_v0 }
 0x732   : > { %1057 = vmin.xlane.f32.xlu1 %v4047_v14  ;;  %2999 = vmatprep.subr.bf16.mxu1 %v3338_v2  ;;  %v3344_v2 = vld [vmem:[#allocation9 + $0x160] sm:$0xff]  }
 0x733   : > { %v4050_v16 = vpop.eup %3408  ;;  %3410 = vpow2.f32 %v1001_v15  ;;  %v4071_v33 = vcvt.s32.f32 %v1039_v25 }
 0x734   : > { %3412 = vpow2.f32 %v1003_v13  ;;  %1005 = vadd.xlane.f32.xlu0 %v4050_v16  ;;  %2986 = vmatpush3.bf16.msra.mxu0 %v3337_v1 }
 0x740   : > { %v4053_v17 = vpop.eup %3410 }
 0x741   : > { %v4058_v19 = vpop.eup %3412  ;;  %1007 = vadd.xlane.f32.xlu0 %v4053_v17 }
 0x742   : > { %v1009_v22 = vsel %vm537_vm8, %v4058_v19, 0.0 }
 0x745   : > { %1010 = vadd.xlane.f32.xlu0 %v1009_v22 }
 0x749   : > { %1028 = vmin.xlane.f32.xlu0 %v4067_v24 }
 0x74d   : > { %1042 = vmin.xlane.f32.xlu0 %v4071_v33 }
 0x7bd   : > { %v1006_v5 = vpop.xlane.xlu0 %1005 }
 0x7be   : > { %3414 = vrcp.f32 %v1006_v5 }
 0x7ca   : > { %v1008_v63 = vpop.xlane.xlu0 %1007 }
 0x7cb   : > { %3416 = vrcp.f32 %v1008_v63  ;;  %v3415_v7 = vpop.eup %3414  ;;  %v3345_v63 = vld [vmem:[#allocation9 + $0x120] sm:$0xff]  }
 0x7cc   : > { %v4075_v60 = vmul.f32 %v3415_v7, %v4050_v16  ;;  %v3347_v7 = vld [vmem:[#allocation9 + $0x118] sm:$0xff]  }
 0x7ce   : > { %v1011_v6 = vpop.xlane.xlu0 %1010  ;;  %v1169_v11 = vrot.slane %v4075_v60, 3 }
 0x7cf   : > { %3418 = vrcp.f32 %v1011_v6  ;;  %v3346_v6 = vld [vmem:[#allocation9 + $0x158] sm:$0xff]  }
 0x7d0   : > { %v4089_v22 = vsel %vm378_vm3, 0.0, %v1169_v11 }
 0x7d1   : > { %v1195_v29 = vrot.slane %v4089_v22, 3  ;;  %v1187_v34 = vrot.slane %v4089_v22, 2  ;;  %v1213_v56 = vrot.slane %v4089_v22, 5 }
 0x7d8   : > { %v3417_v8 = vpop.eup %3416 }
 0x7d9   : > { %v4078_v10 = vmul.f32 %v3417_v8, %v4053_v17  ;;  %v3348_v8 = vld [vmem:[#allocation9 + $0x150] sm:$0xff]  }
 0x7db   : > { %v1170_v12 = vrot.slane %v4078_v10, 3 }
 0x7dc   : > { %v3419_v13 = vpop.eup %3418 }
 0x7dd   : > { %v4083_v15 = vmul.f32 %v3419_v13, %v4058_v19  ;;  %v4086_v20 = vsel %vm378_vm3, %v1169_v11, %v1170_v12  ;;  %v1179_v19 = vrot.slane %v4089_v22, 1  ;;  %v3351_v13 = vld [vmem:[#allocation9 + $0x108] sm:$0xff]  }
 0x7de   : > { %v1180_v23 = vrot.slane %v4086_v20, 1  ;;  %v1196_v17 = vrot.slane %v4086_v20, 3  ;;  %v1188_v25 = vrot.slane %v4086_v20, 2  ;;  %v2856_v48 = vpack.c.bf16 %v4086_v20, %v1169_v11  ;;  %v3349_v11 = vld [vmem:[#allocation9 + $0x110] sm:$0xff]  }
 0x7df   : > { %v1172_v16 = vrot.slane %v4083_v15, 3  ;;  %v1214_v55 = vrot.slane %v4086_v20, 5 }
 0x7e0   : > { %v1181_v36 = vsel %vm348_vm2, %v1179_v19, %v1180_v23  ;;  %v1197_v38 = vsel %vm378_vm3, %v1195_v29, %v1196_v17  ;;  %v1189_v41 = vsel %vm4346_vm9, %v1187_v34, %v1188_v25  ;;  %v1204_v19 = vrot.slane %v4089_v22, 4  ;;  %v3359_v22 = vld [vmem:[#allocation10 + $0x30] sm:$0xff]   ;;  %vm4352_vm9 = vmmov %vm4351_vm0 }
 0x7e1   : > { %v4096_v26 = vsel %vm378_vm3, %v1170_v12, %v1172_v16  ;;  %v1215_v1 = vsel %vm1212_vm6, %v1213_v56, %v1214_v55  ;;  %v3350_v12 = vld [vmem:[#allocation9 + $0x148] sm:$0xff]   ;;  %v3352_v16 = vld [vmem:[#allocation9 + $0x140] sm:$0xff]   ;;  %v3375_v56 = vld [vmem:[#allocation10 + $0x10] sm:$0xff]  }
 0x7e2   : > { %v1182_v31 = vrot.slane %v4096_v26, 1  ;;  %v1198_v32 = vrot.slane %v4096_v26, 3  ;;  %v1190_v35 = vrot.slane %v4096_v26, 2  ;;  %v1216_v52 = vrot.slane %v4096_v26, 5 }
 0x7e3   : > { %v1227_v62 = vpack.c.bf16 %v4096_v26, %v4096_v26 }
 0x7e4   : > { %v1183_v39 = vsel %vm348_vm2, %v1180_v23, %v1182_v31  ;;  %v1199_v40 = vsel %vm378_vm3, %v1196_v17, %v1198_v32  ;;  %v1191_v42 = vsel %vm4347_vm10, %v1188_v25, %v1190_v35  ;;  %v1228_v50 = vpack.c.bf16 %v1182_v31, %v1182_v31  ;;  %v3353_v17 = vld [vmem:[#allocation9 + $0x100] sm:$0xff]   ;;  %vm4353_vm10 = vmmov %vm4351_vm0 }
 0x7e5   : > { %v1222_v43 = vpack.c.bf16 %v1183_v39, %v1181_v36  ;;  %v1224_v44 = vpack.c.bf16 %v1199_v40, %v1197_v38  ;;  %v1223_v46 = vpack.c.bf16 %v1191_v42, %v1189_v41  ;;  %v1230_v51 = vpack.c.bf16 %v1198_v32, %v1198_v32  ;;  %v3355_v36 = vld [vmem:[#allocation10 + $0x38] sm:$0xff]   ;;  %v3360_v40 = vld [vmem:[#allocation10 + $0xf0] sm:$0xff]   ;;  %v3362_v42 = vld [vmem:[#allocation10 + $0x68] sm:$0xff]  }
 0x7e6   : > { %v1217_v59 = vsel %vm1212_vm6, %v1214_v55, %v1216_v52  ;;  %v1229_v0 = vpack.c.bf16 %v1190_v35, %v1190_v35  ;;  %v1207_v23 = vrot.slane %v4096_v26, 4  ;;  %v1205_v25 = vrot.slane %v4086_v20, 4  ;;  %v3354_v26 = vld [vmem:[#allocation10 + $0x78] sm:$0xff]   ;;  %v3358_v20 = vld [vmem:[#allocation10 + $0x70] sm:$0xff]  }
 0x7e7   : > { %1653 = vmatprep.mubr.bf16.mxu1 %v1222_v43  ;;  %1701 = vmatprep.mubr.bf16.mxu0 %v1224_v44  ;;  %v1226_v5 = vpack.c.bf16 %v1217_v59, %v1215_v1  ;;  %v1232_v34 = vpack.c.bf16 %v1216_v52, %v1216_v52  ;;  %v3356_v38 = vld [vmem:[#allocation10 + $0xf8] sm:$0xff]   ;;  %v3361_v41 = vld [vmem:[#allocation10 + $0xb0] sm:$0xff]   ;;  %v3363_v43 = vld [vmem:[#allocation10 + $0x28] sm:$0xff]  }
 0x7e8   : > { %2857 = vmatmul.mubr.msk.bf16.vlgmr.msra.gmra.mxu1 %vm4111_vm11, %v2856_v48  ;;  %1702 = vmatmul.mubr.bf16.vlgmr.msra.gmra.mxu0 %v1223_v46  ;;  %v1208_v29 = vsel %vm1203_vm14, %v1205_v25, %v1207_v23  ;;  %v1206_v31 = vsel %vm1203_vm14, %v1204_v19, %v1205_v25  ;;  %v1231_v35 = vpack.c.bf16 %v1207_v23, %v1207_v23  ;;  %v3357_v39 = vld [vmem:[#allocation10 + $0xb8] sm:$0xff]   ;;  %v3364_v44 = vld [vmem:[#allocation10 + $0xe8] sm:$0xff]   ;;  %v3367_v48 = vld [vmem:[#allocation10 + $0x20] sm:$0xff]  }
 0x7e9   : > { %3000 = vmatpush3.bf16.msra.mxu1 %v3339_v47  ;;  %1661 = vmatprep.mubr.bf16.mxu1 %v1228_v50  ;;  %v1225_v32 = vpack.c.bf16 %v1208_v29, %v1206_v31  ;;  %v3365_v46 = vld [vmem:[#allocation10 + $0xa8] sm:$0xff]   ;;  %v3366_v47 = vld [vmem:[#allocation10 + $0x60] sm:$0xff]   ;;  %v3371_v52 = vld [vmem:[#allocation10 + $0x18] sm:$0xff]  }
 0x7ea   : > { %1709 = vmatprep.mubr.bf16.mxu0 %v1230_v51  ;;  %3001 = vmatprep.subr.bf16.mxu1 %v3340_v49  ;;  %v3368_v49 = vld [vmem:[#allocation10 + $0xe0] sm:$0xff]   ;;  %v3370_v51 = vld [vmem:[#allocation10 + $0x58] sm:$0xff]   ;;  %v3374_v55 = vld [vmem:[#allocation10 + $0x50] sm:$0xff]  }
 0x7eb   : > { %3027 = vmatprep.subr.bf16.mxu0 %v3354_v26  ;;  %v3369_v50 = vld [vmem:[#allocation10 + $0xa0] sm:$0xff]   ;;  %v3376_v59 = vld [vmem:[#allocation10 + $0xd0] sm:$0xff]   ;;  %v3380_v1 = vld [vmem:[#allocation10 + $0xc8] sm:$0xff]  }
 0x7ec   : > { %3028 = vmatpush3.bf16.msra.mxu0 %v3355_v36 }
 0x7ed   : > { %3002 = vmatpush3.bf16.msra.mxu1 %v3341_v53  ;;  %3029 = vmatprep.subr.bf16.mxu0 %v3358_v20  ;;  %v3372_v53 = vld [vmem:[#allocation10 + $0xd8] sm:$0xff]   ;;  %v4131_v20 = vld [vmem:[#allocation12] sm:$0xff] }
 0x7ee   : > { %3003 = vmatprep.subr.bf16.mxu1 %v3342_v54  ;;  %v3373_v54 = vld [vmem:[#allocation10 + $0x98] sm:$0xff]  }
 0x7f0   : > { %1662 = vmatmul.mubr.bf16.gmra.mxu1 %v1227_v62  ;;  %1710 = vmatmul.mubr.bf16.gmra.mxu0 %v1229_v0  ;;  %v3378_v62 = vld [vmem:[#allocation10 + $0x48] sm:$0xff]  }
 0x7f1   : > { %3004 = vmatpush3.bf16.msra.mxu1 %v3343_v61  ;;  %1749 = vmatprep.mubr.bf16.mxu1 %v1226_v5  ;;  %v3377_v61 = vld [vmem:[#allocation10 + $0x90] sm:$0xff]   ;;  %v3379_v0 = vld [vmem:[#allocation10 + $0x8] sm:$0xff]   ;;  %v3382_v5 = vld [vmem:[#allocation10 + $0x40] sm:$0xff]  }
 0x7f2   : > { %3005 = vmatprep.subr.bf16.mxu1 %v3344_v2  ;;  %3030 = vmatpush3.bf16.msra.mxu0 %v3359_v22  ;;  %v3381_v2 = vld [vmem:[#allocation10 + $0x88] sm:$0xff]  }
 0x7f3   : > { %3031 = vmatprep.subr.bf16.mxu0 %v3362_v42 }
 0x7f5   : > { %3006 = vmatpush3.bf16.msra.mxu1 %v3345_v63  ;;  %v3383_v63 = vld [vmem:[#allocation10] sm:$0xff]  }
 0x7f6   : > { %3007 = vmatprep.subr.bf16.mxu1 %v3346_v6  ;;  %3032 = vmatpush3.bf16.msra.mxu0 %v3363_v43  ;;  %v3384_v6 = vld [vmem:[#allocation10 + $0xc0] sm:$0xff]  }
 0x7f7   : > { %3033 = vmatprep.subr.bf16.mxu0 %v3366_v47 }
 0x7f9   : > { %3008 = vmatpush3.bf16.msra.mxu1 %v3347_v7  ;;  %v3385_v7 = vld [vmem:[#allocation10 + $0x80] sm:$0xff]  }
 0x7fa   : > { %3009 = vmatprep.subr.bf16.mxu1 %v3348_v8  ;;  %3034 = vmatpush3.bf16.msra.mxu0 %v3367_v48  ;;  %v3386_v8 = vld [vmem:[#allocation10 + $0x178] sm:$0xff]  }
 0x7fb   : > { %3035 = vmatprep.subr.bf16.mxu0 %v3370_v51 }
 0x7fd   : > { %3010 = vmatpush3.bf16.msra.mxu1 %v3349_v11 }
 0x7fe   : > { %3011 = vmatprep.subr.bf16.mxu1 %v3350_v12  ;;  %3036 = vmatpush3.bf16.msra.mxu0 %v3371_v52 }
 0x7ff   : > { %3037 = vmatprep.subr.bf16.mxu0 %v3374_v55 }
 0x801   : > { %3012 = vmatpush3.bf16.msra.mxu1 %v3351_v13 }
 0x802   : > { %3013 = vmatprep.subr.bf16.mxu1 %v3352_v16  ;;  %3038 = vmatpush3.bf16.msra.mxu0 %v3375_v56 }
 0x803   : > { %3039 = vmatprep.subr.bf16.mxu0 %v3378_v62 }
 0x805   : > { %3014 = vmatpush3.bf16.msra.mxu1 %v3353_v17 }
 0x806   : > { %3055 = vmatprep.subr.bf16.mxu1 %v3356_v38  ;;  %3040 = vmatpush3.bf16.msra.mxu0 %v3379_v0 }
 0x807   : > { %3041 = vmatprep.subr.bf16.mxu0 %v3382_v5 }
 0x808   : > { %1750 = vmatmul.mubr.bf16.vlgmr.msra.gmra.mxu1 %v1225_v32 }
 0x809   : > { %1757 = vmatprep.mubr.bf16.mxu1 %v1232_v34  ;;  %3056 = vmatpush3.bf16.msra.mxu1 %v3357_v39  ;;  %v1331_v39 = vsub.s32 0, %v3919_v28 }
 0x80a   : > { %3057 = vmatprep.subr.bf16.mxu1 %v3360_v40  ;;  %3042 = vmatpush3.bf16.msra.mxu0 %v3383_v63 }
 0x80b   : > { %3083 = vmatprep.subr.bf16.mxu0 %v3386_v8  ;;  %v1332_v40 = vrot.slane %v4131_v20, %v1331_v39 }
 0x80d   : > { %3058 = vmatpush3.bf16.msra.mxu1 %v3361_v41 }
 0x80e   : > { %3059 = vmatprep.subr.bf16.mxu1 %v3364_v44 }
 0x810   : > { %1758 = vmatmul.mubr.bf16.gmra.mxu1 %v1231_v35 }
 0x811   : > { %3060 = vmatpush3.bf16.msra.mxu1 %v3365_v46 }
 0x812   : > { %3061 = vmatprep.subr.bf16.mxu1 %v3368_v49 }
 0x815   : > { %3062 = vmatpush3.bf16.msra.mxu1 %v3369_v50 }
 0x816   : > { %3063 = vmatprep.subr.bf16.mxu1 %v3372_v53 }
 0x819   : > { %3064 = vmatpush3.bf16.msra.mxu1 %v3373_v54 }
 0x81a   : > { %3065 = vmatprep.subr.bf16.mxu1 %v3376_v59 }
 0x81d   : > { %3066 = vmatpush3.bf16.msra.mxu1 %v3377_v61 }
 0x81e   : > { %3067 = vmatprep.subr.bf16.mxu1 %v3380_v1 }
 0x821   : > { %3068 = vmatpush3.bf16.msra.mxu1 %v3381_v2 }
 0x822   : > { %3069 = vmatprep.subr.bf16.mxu1 %v3384_v6 }
 0x825   : > { %3070 = vmatpush3.bf16.msra.mxu1 %v3385_v7 }
 0x8a8   : > { %v2959_v11 = vpop.f32.mrf.mxu1  ;;  %v2987_v12 = vpop.f32.mrf.mxu0 }
 0x8aa   : > { %v2960_v13 = vpop.f32.mrf.mxu1  ;;  %v2988_v16 = vpop.f32.mrf.mxu0 }
 0x8ab   : > { %v2961_v22 = vadd.f32 %v2960_v13, %v2959_v11  ;;  %v2989_v44 = vadd.f32 %v2988_v16, %v2987_v12 }
 0x8ac   : > { %v2962_v23 = vpop.f32.mrf.mxu1  ;;  %v2990_v17 = vpop.f32.mrf.mxu0 }
 0x8ad   : > { %v1656_v42 = vadd.f32 %v2961_v22, %v1332_v40 }
 0x8ae   : > { %v2963_v25 = vpop.f32.mrf.mxu1  ;;  %v2991_v19 = vpop.f32.mrf.mxu0 }
 0x8af   : > { %v2964_v41 = vadd.f32 %v2963_v25, %v2962_v23  ;;  %v1704_v50 = vadd.f32 %v2989_v44, %v1656_v42  ;;  %v2992_v52 = vadd.f32 %v2991_v19, %v2990_v17 }
 0x8b0   : > { %v2965_v29 = vpop.f32.mrf.mxu1  ;;  %v2993_v31 = vpop.f32.mrf.mxu0 }
 0x8b1   : > { %v1659_v47 = vadd.f32 %v2964_v41, %v1332_v40 }
 0x8b2   : > { %v2966_v32 = vpop.f32.mrf.mxu1  ;;  %v2994_v34 = vpop.f32.mrf.mxu0 }
 0x8b3   : > { %v2967_v48 = vadd.f32 %v2966_v32, %v2965_v29  ;;  %v1707_v55 = vadd.f32 %v2992_v52, %v1659_v47  ;;  %v2995_v62 = vadd.f32 %v2994_v34, %v2993_v31  ;;  %v3387_v47 = vld [vmem:[#allocation10 + $0x138] sm:$0xff]  }
 0x8b4   : > { %v2968_v35 = vpop.f32.mrf.mxu1  ;;  %v2996_v26 = vpop.f32.mrf.mxu0 }
 0x8b5   : > { %v1664_v56 = vadd.f32 %v2967_v48, %v1332_v40 }
 0x8b6   : > { %v2969_v36 = vpop.f32.mrf.mxu1  ;;  %v2997_v38 = vpop.f32.mrf.mxu0 }
 0x8b7   : > { %v1712_v5 = vadd.f32 %v2995_v62, %v1664_v56 }
 0x8c8   : > { %v3015_v43 = vpop.f32.mrf.mxu1 }
 0x8ca   : > { %v3016_v46 = vpop.f32.mrf.mxu1 }
 0x8cb   : > { %v3017_v49 = vadd.f32 %v3016_v46, %v3015_v43 }
 0x8cc   : > { %v3018_v51 = vpop.f32.mrf.mxu1 }
 0x8cd   : > { %v1752_v53 = vadd.f32 %v3017_v49, %v1704_v50  ;;  %v3388_v49 = vld [vmem:[#allocation10 + $0x170] sm:$0xff]  }
 0x8ce   : > { %v3019_v54 = vpop.f32.mrf.mxu1 }
 0x8cf   : > { %v3020_v59 = vadd.f32 %v3019_v54, %v3018_v51  ;;  %v1768_v1 = vrot.slane %v1752_v53, 3  ;;  %v3389_v53 = vld [vmem:[#allocation10 + $0x130] sm:$0xff]   ;;  %v3390_v54 = vld [vmem:[#allocation10 + $0x168] sm:$0xff]  }
 0x8d0   : > { %v3021_v61 = vpop.f32.mrf.mxu1 }
 0x8d1   : > { %v1755_v0 = vadd.f32 %v3020_v59, %v1707_v55  ;;  %v4140_v12 = vsel %vm378_vm3, 0.0, %v1768_v1 }
 0x8d2   : > { %v3022_v2 = vpop.f32.mrf.mxu1  ;;  %v1786_v19 = vrot.slane %v4140_v12, 2  ;;  %v1778_v31 = vrot.slane %v4140_v12, 1  ;;  %v1794_v35 = vrot.slane %v4140_v12, 3  ;;  %v1810_v56 = vrot.slane %v4140_v12, 5 }
 0x8d3   : > { %v1769_v63 = vrot.slane %v1755_v0, 3  ;;  %v3023_v6 = vadd.f32 %v3022_v2, %v3021_v61  ;;  %v3391_v61 = vld [vmem:[#allocation10 + $0x128] sm:$0xff]  }
 0x8d4   : > { %v3024_v7 = vpop.f32.mrf.mxu1 }
 0x8d5   : > { %v4137_v8 = vsel %vm378_vm3, %v1768_v1, %v1769_v63  ;;  %v1760_v11 = vadd.f32 %v3023_v6, %v1712_v5  ;;  %v3393_v5 = vld [vmem:[#allocation10 + $0x120] sm:$0xff]   ;;  %v3395_v6 = vld [vmem:[#allocation10 + $0x118] sm:$0xff]   ;;  %v3396_v7 = vld [vmem:[#allocation10 + $0x150] sm:$0xff]  }
 0x8d6   : > { %v3025_v13 = vpop.f32.mrf.mxu1  ;;  %v1787_v16 = vrot.slane %v4137_v8, 2  ;;  %v1779_v17 = vrot.slane %v4137_v8, 1  ;;  %v1795_v25 = vrot.slane %v4137_v8, 3  ;;  %v2908_v48 = vpack.c.bf16 %v4137_v8, %v1768_v1  ;;  %v3392_v1 = vld [vmem:[#allocation10 + $0x160] sm:$0xff]  }
 0x8d7   : > { %v1771_v23 = vrot.slane %v1760_v11, 3  ;;  %v1811_v55 = vrot.slane %v4137_v8, 5  ;;  %v3397_v11 = vld [vmem:[#allocation10 + $0x110] sm:$0xff]   ;;  %v3398_v13 = vld [vmem:[#allocation10 + $0x148] sm:$0xff]  }
 0x8d8   : > { %v1780_v36 = vsel %vm348_vm2, %v1778_v31, %v1779_v17  ;;  %v1788_v38 = vsel %vm4350_vm4, %v1786_v19, %v1787_v16  ;;  %v1796_v22 = vsel %vm378_vm3, %v1794_v35, %v1795_v25  ;;  %v3401_v19 = vld [vmem:[#allocation10 + $0x100] sm:$0xff]   ;;  %v1802_v31 = vrot.slane %v4140_v12, 4 }
 0x8d9   : > { %v1772_v29 = vsel %vm378_vm3, %v1769_v63, %v1771_v23  ;;  %v1812_v0 = vsel %vm1212_vm6, %v1810_v56, %v1811_v55  ;;  %v3394_v63 = vld [vmem:[#allocation10 + $0x158] sm:$0xff]   ;;  %v3400_v23 = vld [vmem:[#allocation10 + $0x140] sm:$0xff]  }
 0x8da   : > { %v1789_v32 = vrot.slane %v1772_v29, 2  ;;  %v1781_v34 = vrot.slane %v1772_v29, 1  ;;  %v1797_v26 = vrot.slane %v1772_v29, 3  ;;  %v1813_v52 = vrot.slane %v1772_v29, 5 }
 0x8db   : > { %v1824_v45 = vpack.c.bf16 %v1772_v29, %v1772_v29 }
 0x8dc   : > { %v1782_v40 = vsel %vm348_vm2, %v1779_v17, %v1781_v34  ;;  %v1798_v41 = vsel %vm378_vm3, %v1795_v25, %v1797_v26  ;;  %v1790_v42 = vsel %vm4351_vm0, %v1787_v16, %v1789_v32  ;;  %v1825_v50 = vpack.c.bf16 %v1781_v34, %v1781_v34  ;;  %v3399_v16 = vld [vmem:[#allocation10 + $0x108] sm:$0xff]  }
 0x8dd   : > { %v1819_v43 = vpack.c.bf16 %v1782_v40, %v1780_v36  ;;  %v1821_v44 = vpack.c.bf16 %v1798_v41, %v1796_v22  ;;  %v1820_v46 = vpack.c.bf16 %v1790_v42, %v1788_v38  ;;  %v1827_v51 = vpack.c.bf16 %v1797_v26, %v1797_v26 }
 0x8de   : > { %v1814_v59 = vsel %vm1212_vm6, %v1811_v55, %v1813_v52  ;;  %v1826_v62 = vpack.c.bf16 %v1789_v32, %v1789_v32  ;;  %v1805_v17 = vrot.slane %v1772_v29, 4  ;;  %v1803_v25 = vrot.slane %v4137_v8, 4 }
 0x8df   : > { %2250 = vmatprep.mubr.bf16.mxu0 %v1819_v43  ;;  %2298 = vmatprep.mubr.bf16.mxu1 %v1821_v44  ;;  %v1823_v2 = vpack.c.bf16 %v1814_v59, %v1812_v0  ;;  %v1829_v26 = vpack.c.bf16 %v1813_v52, %v1813_v52  ;;  %v1928_v52 = vsub.s32 1, %v3919_v28 }
 0x8e0   : > { %2909 = vmatmul.mubr.msk.bf16.vlgmr.msra.gmra.mxu0 %vm4111_vm11, %v2908_v48  ;;  %2299 = vmatmul.mubr.bf16.vlgmr.msra.gmra.mxu1 %v1820_v46  ;;  %v1806_v32 = vsel %vm1203_vm14, %v1803_v25, %v1805_v17  ;;  %v1804_v34 = vsel %vm1203_vm14, %v1802_v31, %v1803_v25  ;;  %v1828_v36 = vpack.c.bf16 %v1805_v17, %v1805_v17 }
 0x8e1   : > { %3084 = vmatpush3.bf16.msra.mxu0 %v3387_v47  ;;  %2258 = vmatprep.mubr.bf16.mxu0 %v1825_v50  ;;  %v1822_v35 = vpack.c.bf16 %v1806_v32, %v1804_v34 }
 0x8e2   : > { %2306 = vmatprep.mubr.bf16.mxu1 %v1827_v51  ;;  %3085 = vmatprep.subr.bf16.mxu0 %v3388_v49 }
 0x8e5   : > { %3086 = vmatpush3.bf16.msra.mxu0 %v3389_v53  ;;  %v1929_v53 = vrot.slane %v4131_v20, %v1928_v52 }
 0x8e6   : > { %3087 = vmatprep.subr.bf16.mxu0 %v3390_v54 }
 0x8e8   : > { %2259 = vmatmul.mubr.bf16.gmra.mxu0 %v1824_v45  ;;  %2307 = vmatmul.mubr.bf16.gmra.mxu1 %v1826_v62 }
 0x8e9   : > { %3088 = vmatpush3.bf16.msra.mxu0 %v3391_v61  ;;  %2346 = vmatprep.mubr.bf16.mxu0 %v1823_v2 }
 0x8ea   : > { %3089 = vmatprep.subr.bf16.mxu0 %v3392_v1 }
 0x8ed   : > { %3090 = vmatpush3.bf16.msra.mxu0 %v3393_v5 }
 0x8ee   : > { %3091 = vmatprep.subr.bf16.mxu0 %v3394_v63 }
 0x8f1   : > { %3092 = vmatpush3.bf16.msra.mxu0 %v3395_v6 }
 0x8f2   : > { %3093 = vmatprep.subr.bf16.mxu0 %v3396_v7 }
 0x8f5   : > { %3094 = vmatpush3.bf16.msra.mxu0 %v3397_v11 }
 0x8f6   : > { %3095 = vmatprep.subr.bf16.mxu0 %v3398_v13 }
 0x8f9   : > { %3096 = vmatpush3.bf16.msra.mxu0 %v3399_v16 }
 0x8fa   : > { %3097 = vmatprep.subr.bf16.mxu0 %v3400_v23 }
 0x8fd   : > { %3098 = vmatpush3.bf16.msra.mxu0 %v3401_v19 }
 0x900   : > { %2347 = vmatmul.mubr.bf16.vlgmr.msra.gmra.mxu0 %v1822_v35 }
 0x901   : > { %2354 = vmatprep.mubr.bf16.mxu0 %v1829_v26 }
 0x908   : > { %2355 = vmatmul.mubr.bf16.gmra.mxu0 %v1828_v36 }
 0x9a0   : > { %v3043_v38 = vpop.f32.mrf.mxu0  ;;  %v3071_v29 = vpop.f32.mrf.mxu1 }
 0x9a2   : > { %v3044_v40 = vpop.f32.mrf.mxu0  ;;  %v3072_v8 = vpop.f32.mrf.mxu1 }
 0x9a3   : > { %v3045_v54 = vadd.f32 %v3044_v40, %v3043_v38  ;;  %v3073_v61 = vadd.f32 %v3072_v8, %v3071_v29 }
 0x9a4   : > { %v3046_v22 = vpop.f32.mrf.mxu0  ;;  %v3074_v41 = vpop.f32.mrf.mxu1 }
 0x9a5   : > { %v2253_v55 = vadd.f32 %v3045_v54, %v1929_v53 }
 0x9a6   : > { %v3047_v42 = vpop.f32.mrf.mxu0  ;;  %v3075_v43 = vpop.f32.mrf.mxu1 }
 0x9a7   : > { %v3048_v56 = vadd.f32 %v3047_v42, %v3046_v22  ;;  %v2301_v62 = vadd.f32 %v3073_v61, %v2253_v55  ;;  %v3076_v63 = vadd.f32 %v3075_v43, %v3074_v41 }
 0x9a8   : > { %v3049_v12 = vpop.f32.mrf.mxu0  ;;  %v3077_v44 = vpop.f32.mrf.mxu1 }
 0x9a9   : > { %v2256_v0 = vadd.f32 %v3048_v56, %v1929_v53 }
 0x9aa   : > { %v3050_v46 = vpop.f32.mrf.mxu0  ;;  %v3078_v47 = vpop.f32.mrf.mxu1 }
 0x9ab   : > { %v3051_v2 = vadd.f32 %v3050_v46, %v3049_v12  ;;  %v2304_v11 = vadd.f32 %v3076_v63, %v2256_v0  ;;  %v3079_v31 = vadd.f32 %v3078_v47, %v3077_v44 }
 0x9ac   : > { %v3052_v48 = vpop.f32.mrf.mxu0  ;;  %v3080_v49 = vpop.f32.mrf.mxu1 }
 0x9ad   : > { %v2261_v23 = vadd.f32 %v3051_v2, %v1929_v53 }
 0x9ae   : > { %v3053_v50 = vpop.f32.mrf.mxu0  ;;  %v3081_v51 = vpop.f32.mrf.mxu1 }
 0x9af   : > { %v2309_v26 = vadd.f32 %v3079_v31, %v2261_v23 }
 0x9c0   : > { %v3099_v59 = vpop.f32.mrf.mxu0 }
 0x9c2   : > { %v3100_v45 = vpop.f32.mrf.mxu0 }
 0x9c3   : > { %v3101_v1 = vadd.f32 %v3100_v45, %v3099_v59 }
 0x9c4   : > { %v3102_v5 = vpop.f32.mrf.mxu0 }
 0x9c5   : > { %v4170_v6 = vadd.f32 %v3101_v1, %v2301_v62 }
 0x9c6   : > { %v3103_v7 = vpop.f32.mrf.mxu0 }
 0x9c7   : > { %v4173_v13 = vmul.f32 0.70710677, %v4170_v6  ;;  %v3104_v16 = vadd.f32 %v3103_v7, %v3102_v5 }
 0x9c8   : > { %v3105_v17 = vpop.f32.mrf.mxu0 }
 0x9c9   : > { %v2368_v25 = vand.u32 2147483647, %v4173_v13  ;;  %v4176_v19 = vadd.f32 %v3104_v16, %v2304_v11  ;;  %vm2428_vm7 = vcmp.ge.f32.partialorder %v4173_v13, 0.0 }
 0x9ca   : > { %v3106_v32 = vpop.f32.mrf.mxu0 }
 0x9cb   : > { %v2371_v34 = vmul.f32 0.3275911, %v2368_v25  ;;  %v4179_v35 = vmul.f32 0.70710677, %v4176_v19  ;;  %v3107_v36 = vadd.f32 %v3106_v32, %v3105_v17  ;;  %v2410_v46 = vsub.f32 0.0, %v2368_v25 }
 0x9cc   : > { %v3108_v38 = vpop.f32.mrf.mxu0 }
 0x9cd   : > { %v2374_v29 = vadd.f32 1.0, %v2371_v34  ;;  %v2369_v40 = vand.u32 2147483647, %v4179_v35  ;;  %v4182_v8 = vadd.f32 %v3107_v36, %v2309_v26  ;;  %v2413_v48 = vmul.f32 %v2410_v46, %v2368_v25 }
 0x9ce   : > { %v3109_v22 = vpop.f32.mrf.mxu0  ;;  %vm2429_vm15 = vcmp.ge.f32.partialorder %v4179_v35, 0.0 }
 0x9cf   : > { %3420 = vrcp.f32 %v2374_v29  ;;  %v2372_v41 = vmul.f32 0.3275911, %v2369_v40  ;;  %v4185_v42 = vmul.f32 0.70710677, %v4182_v8  ;;  %v2411_v49 = vsub.f32 0.0, %v2369_v40 }
 0x9d0   : > { %v2416_v53 = vmul.f32 1.442695, %v2413_v48 }
 0x9d1   : > { %v2375_v43 = vadd.f32 1.0, %v2372_v41  ;;  %v2370_v12 = vand.u32 2147483647, %v4185_v42  ;;  %v2414_v54 = vmul.f32 %v2411_v49, %v2369_v40  ;;  %vm2430_vm5 = vcmp.ge.f32.partialorder %v4185_v42, 0.0 }
 0x9d3   : > { %3422 = vrcp.f32 %v2375_v43  ;;  %v2373_v44 = vmul.f32 0.3275911, %v2370_v12  ;;  %v2412_v55 = vsub.f32 0.0, %v2370_v12  ;;  %v2418_v62 = vmul.f32 1.442695, %v2414_v54 }
 0x9d5   : > { %v2376_v47 = vadd.f32 1.0, %v2373_v44  ;;  %v2415_v0 = vmul.f32 %v2412_v55, %v2370_v12 }
 0x9d7   : > { %3424 = vrcp.f32 %v2376_v47  ;;  %v2420_v16 = vmul.f32 1.442695, %v2415_v0 }
 0x9d8   : > { %3426 = vpow2.f32 %v2416_v53 }
 0x9d9   : > { %3428 = vpow2.f32 %v2418_v62 }
 0x9da   : > { %3430 = vpow2.f32 %v2420_v16 }
 0x9dc   : > { %v3421_v50 = vpop.eup %3420 }
 0x9dd   : > { %v2383_v51 = vmul.f32 1.0614054, %v3421_v50 }
 0x9df   : > { %v2386_v56 = vadd.f32 -1.4531521, %v2383_v51 }
 0x9e0   : > { %v3423_v59 = vpop.eup %3422 }
 0x9e1   : > { %v2389_v61 = vmul.f32 %v3421_v50, %v2386_v56  ;;  %v2384_v45 = vmul.f32 1.0614054, %v3423_v59 }
 0x9e3   : > { %v2392_v1 = vadd.f32 1.4214138, %v2389_v61  ;;  %v2387_v2 = vadd.f32 -1.4531521, %v2384_v45  ;;  %v2362_v61 = vmul.f32 0.5, %v4170_v6  ;;  %v2363_v6 = vmul.f32 0.5, %v4176_v19 }
 0x9e4   : > { %v3425_v5 = vpop.eup %3424  ;;  %v2551_v19 = vsub.s32 5, %v3919_v28 }
 0x9e5   : > { %v2395_v63 = vmul.f32 %v3421_v50, %v2392_v1  ;;  %v2390_v7 = vmul.f32 %v3423_v59, %v2387_v2  ;;  %v2385_v11 = vmul.f32 1.0614054, %v3425_v5  ;;  %v3427_v22 = vpop.eup %3426  ;;  %v1165_v1 = vld [vmem:[%s4324_s5] sm:$0xff] }
 0x9e6   : > { %v3429_v48 = vpop.eup %3428 }
 0x9e7   : > { %v2398_v23 = vadd.f32 -0.28449672, %v2395_v63  ;;  %v2393_v17 = vadd.f32 1.4214138, %v2390_v7  ;;  %v2388_v25 = vadd.f32 -1.4531521, %v2385_v11  ;;  %v3431_v62 = vpop.eup %3430 }
 0x9e8   : > { %v2488_v63 = vsub.s32 2, %v3919_v28  ;;  %v2509_v7 = vsub.s32 3, %v3919_v28 }
 0x9e9   : > { %v2401_v31 = vmul.f32 %v3421_v50, %v2398_v23  ;;  %v2396_v32 = vmul.f32 %v3423_v59, %v2393_v17  ;;  %v2391_v34 = vmul.f32 %v3425_v5, %v2388_v25  ;;  %v2468_v23 = vrot.slane %v1165_v1, %v1928_v52 }
 0x9ea   : > { %v2530_v17 = vsub.s32 4, %v3919_v28 }
 0x9eb   : > { %v2404_v26 = vadd.f32 0.2548296, %v2401_v31  ;;  %v2399_v36 = vadd.f32 -0.28449672, %v2396_v32  ;;  %v2394_v38 = vadd.f32 1.4214138, %v2391_v34  ;;  %v2489_v32 = vrot.slane %v1165_v1, %v2488_v63 }
 0x9ed   : > { %v2407_v29 = vmul.f32 %v3421_v50, %v2404_v26  ;;  %v2402_v40 = vmul.f32 %v3423_v59, %v2399_v36  ;;  %v2397_v41 = vmul.f32 %v3425_v5, %v2394_v38  ;;  %v2510_v36 = vrot.slane %v1165_v1, %v2509_v7 }
 0x9ee   : > { %v2364_v38 = vmul.f32 0.5, %v4182_v8 }
 0x9ef   : > { %v2422_v43 = vmul.f32 %v3427_v22, %v2407_v29  ;;  %v2405_v12 = vadd.f32 0.2548296, %v2402_v40  ;;  %v2400_v44 = vadd.f32 -0.28449672, %v2397_v41  ;;  %v2458_v40 = vrot.slane %v1165_v1, %v1331_v39 }
 0x9f1   : > { %v2425_v46 = vsub.f32 1.0, %v2422_v43  ;;  %v2408_v47 = vmul.f32 %v3423_v59, %v2405_v12  ;;  %v2403_v49 = vmul.f32 %v3425_v5, %v2400_v44  ;;  %v2531_v43 = vrot.slane %v1165_v1, %v2530_v17 }
 0x9f3   : > { %v2431_v51 = vsub.f32 0.0, %v2425_v46  ;;  %v2423_v53 = vmul.f32 %v3429_v48, %v2408_v47  ;;  %v2406_v54 = vadd.f32 0.2548296, %v2403_v49  ;;  %v2552_v49 = vrot.slane %v1165_v1, %v2551_v19 }
 0x9f5   : > { %v2434_v55 = vsel %vm2428_vm7, %v2425_v46, %v2431_v51  ;;  %v2426_v56 = vsub.f32 1.0, %v2423_v53  ;;  %v2409_v45 = vmul.f32 %v3425_v5, %v2406_v54 }
 0x9f6   : > { %v2437_v50 = vadd.f32 1.0, %v2434_v55 }
 0x9f7   : > { %v2432_v0 = vsub.f32 0.0, %v2426_v56  ;;  %v2424_v2 = vmul.f32 %v3431_v62, %v2409_v45 }
 0x9f8   : > { %v2440_v59 = vmul.f32 %v2437_v50, %v2362_v61 }
 0x9f9   : > { %v2435_v13 = vsel %vm2429_vm15, %v2426_v56, %v2432_v0  ;;  %v2427_v5 = vsub.f32 1.0, %v2424_v2 }
 0x9fa   : > { %v2446_v11 = vrot.slane %v2440_v59, 3  ;;  %v2438_v16 = vadd.f32 1.0, %v2435_v13 }
 0x9fb   : > { %v2433_v35 = vsub.f32 0.0, %v2427_v5 }
 0x9fc   : > { %v2454_v25 = vsel %vm378_vm3, 0.0, %v2446_v11  ;;  %v2441_v31 = vmul.f32 %v2438_v16, %v2363_v6 }
 0x9fd   : > { %v2436_v26 = vsel %vm2430_vm5, %v2427_v5, %v2433_v35  ;;  %v2469_v52 = vmul.f32 %v2468_v23, %v2454_v25  ;;  %v2490_v41 = vmul.f32 %v2489_v32, %v2454_v25  ;;  %v2511_v47 = vmul.f32 %v2510_v36, %v2454_v25 }
 0x9fe   : > { %v2447_v34 = vrot.slane %v2441_v31, 3  ;;  %v2439_v29 = vadd.f32 1.0, %v2436_v26  ;;  %v2459_v55 = vmul.f32 %v2458_v40, %v2454_v25  ;;  %v2532_v61 = vmul.f32 %v2531_v43, %v2454_v25 }
 0x9ff   : > { %v2475_v53 = vrot.slane %v2469_v52, 1  ;;  %v2496_v62 = vrot.slane %v2490_v41, 2  ;;  %v2517_v59 = vrot.slane %v2511_v47, 3  ;;  %v2553_v13 = vmul.f32 %v2552_v49, %v2454_v25 }
 0xa00   : > { %v2448_v22 = vsel %vm378_vm3, %v2446_v11, %v2447_v34  ;;  %v2442_v12 = vmul.f32 %v2439_v29, %v2364_v38  ;;  %v2538_v17 = vrot.slane %v2532_v61, 4 }
 0xa01   : > { %v2470_v44 = vmul.f32 %v2468_v23, %v2448_v22  ;;  %v2491_v46 = vmul.f32 %v2489_v32, %v2448_v22  ;;  %v2512_v42 = vmul.f32 %v2510_v36, %v2448_v22  ;;  %v2533_v48 = vmul.f32 %v2531_v43, %v2448_v22 }
 0xa02   : > { %v2449_v51 = vrot.slane %v2442_v12, 3  ;;  %v2554_v50 = vmul.f32 %v2552_v49, %v2448_v22  ;;  %v2559_v52 = vrot.slane %v2553_v13, 5  ;;  %v2460_v41 = vmul.f32 %v2458_v40, %v2448_v22  ;;  %v4218_v22 = vpop.xlane.xlu0 %1028 }
 0xa03   : > { %v2476_v54 = vrot.slane %v2470_v44, 1  ;;  %v2497_v8 = vrot.slane %v2491_v46, 2  ;;  %v2518_v56 = vrot.slane %v2512_v42, 3  ;;  %v2539_v2 = vrot.slane %v2533_v48, 4 }
 0xa04   : > { %v2450_v39 = vsel %vm378_vm3, %v2447_v34, %v2449_v51  ;;  %v2560_v31 = vrot.slane %v2554_v50, 5  ;;  %v1024_v13 = vand.u32 65535, %v4056_v18  ;;  %vm1030_vm12 = vcmp.eq.f32.partialorder %v4067_v24, %v4218_v22 }
 0xa05   : > { %v2477_v45 = vsel %vm348_vm2, %v2475_v53, %v2476_v54  ;;  %v2498_v7 = vsel %vm4352_vm9, %v2496_v62, %v2497_v8  ;;  %v2471_v1 = vmul.f32 %v2468_v23, %v2450_v39  ;;  %v2492_v11 = vmul.f32 %v2489_v32, %v2450_v39 }
 0xa06   : > { %v2483_v0 = vadd.f32 %v2477_v45, %v2459_v55  ;;  %v2513_v6 = vmul.f32 %v2510_v36, %v2450_v39  ;;  %v2519_v5 = vsel %vm378_vm3, %v2517_v59, %v2518_v56  ;;  %v2461_v35 = vmul.f32 %v2458_v40, %v2450_v39  ;;  %v4224_v59 = vpop.xlane.xlu0 %1042 }
 0xa07   : > { %v2478_v26 = vrot.slane %v2471_v1, 1  ;;  %v2499_v34 = vrot.slane %v2492_v11, 2  ;;  %v2534_v19 = vmul.f32 %v2531_v43, %v2450_v39  ;;  %v2540_v29 = vsel %vm1203_vm14, %v2538_v17, %v2539_v2  ;;  %v4237_v11 = vpop.xlane.xlu1 %1057 }
 0xa08   : > { %v2504_v16 = vadd.f32 %v2498_v7, %v2483_v0  ;;  %v2520_v12 = vrot.slane %v2513_v6, 3  ;;  %v2555_v44 = vmul.f32 %v2552_v49, %v2450_v39  ;;  %v2561_v46 = vsel %vm1212_vm6, %v2559_v52, %v2560_v31 }
 0xa09   : > { %v2485_v25 = vadd.f32 %v2478_v26, %v2461_v35  ;;  %v2479_v23 = vsel %vm348_vm2, %v2476_v54, %v2478_v26  ;;  %v2541_v47 = vrot.slane %v2534_v19, 4  ;;  %v2500_v48 = vsel %vm4353_vm10, %v2497_v8, %v2499_v34 }
 0xa0a   : > { %v2525_v38 = vadd.f32 %v2519_v5, %v2504_v16  ;;  %v2484_v36 = vadd.f32 %v2479_v23, %v2460_v41  ;;  %v2562_v55 = vrot.slane %v2555_v44, 5  ;;  %v2521_v61 = vsel %vm378_vm3, %v2518_v56, %v2520_v12 }
 0xa0b   : > { %v2506_v42 = vadd.f32 %v2499_v34, %v2485_v25  ;;  %v2542_v54 = vsel %vm1203_vm14, %v2539_v2, %v2541_v47  ;;  %v718_v62 = vrot.slane %v3978_v4, 4  ;;  %v1038_v56 = vand.u32 65535, %v4063_v21 }
 0xa0c   : > { %v2546_v32 = vadd.f32 %v2540_v29, %v2525_v38  ;;  %v2505_v43 = vadd.f32 %v2500_v48, %v2484_v36  ;;  %v2563_v45 = vsel %vm1212_vm6, %v2560_v31, %v2562_v55  ;;  %v1148_v2 = vmul.f32 %v4038_v3, %v4038_v3 }
 0xa0d   : > { %v2527_v53 = vadd.f32 %v2520_v12, %v2506_v42  ;;  %v719_v7 = vadd.f32 %v718_v62, %v3978_v4  ;;  %v1147_v1 = vmul.f32 %v4040_v58, %v4040_v58  ;;  %vm1044_vm2 = vcmp.eq.f32.partialorder %v4071_v33, %v4224_v59 }
 0xa0e   : > { %v2567_v51 = vadd.f32 %v2561_v46, %v2546_v32  ;;  %v2526_v40 = vadd.f32 %v2521_v61, %v2505_v43  ;;  %v1040_v21 = vcvt.s32.f32 %v1038_v56  ;;  %v1026_v18 = vcvt.s32.f32 %v1024_v13 }
 0xa0f   : > { %v2548_v49 = vadd.f32 %v2541_v47, %v2527_v53  ;;  %v1053_v4 = vand.u32 65535, %v4044_v9  ;;  %v720_v6 = vrot.slane %v719_v7, 2  ;;  %vm1059_vm11 = vcmp.eq.f32.partialorder %v4047_v14, %v4237_v11 }
 0xa10   : > { %2570 = vadd.xlane.f32.xlu0 %v2567_v51  ;;  %v2547_v50 = vadd.f32 %v2542_v54, %v2526_v40  ;;  %v1045_v16 = vsel %vm1044_vm2, %v1040_v21, inf  ;;  %v1031_v3 = vsel %vm1030_vm12, %v1026_v18, inf  ;;  %v1076_v31 = vcvt.s32.f32 %v3919_v28 }
 0xa11   : > { %v2569_v39 = vadd.f32 %v2562_v55, %v2548_v49  ;;  %v1055_v58 = vcvt.s32.f32 %v1053_v4  ;;  %v721_v5 = vadd.f32 %v720_v6, %v719_v7  ;;  %v1077_v35 = vcvt.s32.f32 %v3922_v30 }
 0xa12   : > { %v2568_v8 = vadd.f32 %v2563_v45, %v2547_v50  ;;  %v1078_v9 = vcvt.s32.f32 %v3929_v37  ;;  %v2580_v38 = vrot.slane %v4131_v20, %v2488_v63  ;;  %v1139_v52 = vadd.f32 1.0, %v1076_v31 }
 0xa13   : > { %v2574_v0 = vsel %vm537_vm8, %v2569_v39, 0.0  ;;  %v1060_v33 = vsel %vm1059_vm11, %v1055_v58, inf  ;;  %v722_v17 = vrot.slane %v721_v5, 1  ;;  %v1140_v29 = vadd.f32 1.0, %v1077_v35 }
 0xa14   : > { %2575 = vadd.xlane.f32.xlu0 %v2574_v0  ;;  %2572 = vadd.xlane.f32.xlu1 %v2568_v8  ;;  %vm4354_vm10 = vcmask 1041408  }
 0xa15   : > { %v723_v24 = vadd.f32 %v722_v17, %v721_v5  ;;  %v1035_v5 = vcvt.f32.s32 %v4218_v22 }
 0xa17   : > { %vm1079_vm4 = vcmp.lt.f32.partialorder %v1076_v31, %v723_v24  ;;  %vm1080_vm0 = vcmp.lt.f32.partialorder %v1077_v35, %v723_v24  ;;  %vm1081_vm7 = vcmp.lt.f32.partialorder %v1078_v9, %v723_v24  ;;  %vm1142_vm15 = vcmp.lt.f32.partialorder %v1140_v29, %v723_v24 }
 0xa18   : > { %1151 = vadd.xlane.f32.xlu0 %v1148_v2  ;;  %1149 = vadd.xlane.f32.xlu1 %v1147_v1  ;;  %v2801_v26 = vsel %vm1079_vm4, 1.0, %v3663_v27  ;;  %v2802_v34 = vsel %vm1080_vm0, 1.0, %v3663_v27  ;;  %v2803_v14 = vsel %vm1081_vm7, 1.0, %v3663_v27  ;;  %vm1141_vm5 = vcmp.lt.f32.partialorder %v1139_v52, %v723_v24 }
 0xa19   : > { %v3293_v19 = vpack.i.bf16 %v2802_v34, %v2801_v26  ;;  %v2805_v42 = vsel %vm1142_vm15, 1.0, %v3663_v27  ;;  %v2804_v28 = vsel %vm1141_vm5, 1.0, %v3663_v27  ;;  %v2598_v20 = vmax.f32 %v723_v24, 1.0 }
 0xa1a   : > { %v1036_v9 = vshll.u32 %v1035_v5, 16 }
 0xa1b   : > { %3432 = vrcp.f32 %v2598_v20 }
 0xa1c   : > { %1046 = vmin.xlane.f32.xlu0 %v1045_v16  ;;  %1032 = vmin.xlane.f32.xlu1 %v1031_v3  ;;  %v1064_v3 = vcvt.f32.s32 %v4237_v11 }
 0xa1e   : > { %v1065_v35 = vshll.u32 %v1064_v3, 16 }
 0xa20   : > { %1061 = vmin.xlane.f32.xlu1 %v1060_v33  ;;  %v1049_v33 = vcvt.f32.s32 %v4224_v59 }
 0xa28   : > { %v3433_v18 = vpop.eup %3432 }
 0xa31   : > { %1100 = vperm.xlu1 %3292, %v2803_v14  }
 0xa32   : > { %3294 = vperm.xlu0 %3291, %v3293_v19  }
 0xa35   : > { %2603 = vperm.xlu1 %3292, %v723_v24  }
 0xa99   : > { %v2571_v30 = vpop.xlane.xlu0 %2570 }
 0xa9a   : > { %v2581_v37 = vadd.f32 %v2580_v38, %v2571_v30 }
 0xa9c   : > { %v2584_v12 = vmul.f32 %v2801_v26, %v2581_v37  ;;  %v1050_v26 = vshll.u32 %v1049_v33, 16 }
 0xa9d   : > { %v2576_v41 = vpop.xlane.xlu0 %2575  ;;  %v2573_v25 = vpop.xlane.xlu1 %2572 }
 0xa9e   : > { %v2583_v44 = vadd.f32 %v2580_v38, %v2576_v41  ;;  %v2582_v23 = vadd.f32 %v2580_v38, %v2573_v25  ;;  %v2587_v63 = vsel %vm711_vm13, %v2584_v12, 0.0 }
 0xaa0   : > { %v2586_v32 = vmul.f32 %v2803_v14, %v2583_v44  ;;  %v2585_v36 = vmul.f32 %v2802_v34, %v2582_v23 }
 0xaa1   : > { %v1152_v46 = vpop.xlane.xlu0 %1151  ;;  %v1150_v47 = vpop.xlane.xlu1 %1149 }
 0xaa2   : > { %v2588_v48 = vsel %vm711_vm13, %v2585_v36, 0.0  ;;  %v1154_v51 = vmul.f32 %v2805_v42, %v1152_v46  ;;  %v1153_v43 = vmul.f32 %v2804_v28, %v1150_v47  ;;  %v2590_v55 = vsel %vm715_vm1, %v2586_v32, 0.0 }
 0xaa3   : > { %v2589_v53 = vadd.f32 %v2588_v48, %v2587_v63 }
 0xaa4   : > { %v1156_v61 = vsel %vm711_vm13, %v1154_v51, 0.0  ;;  %v1155_v40 = vsel %vm711_vm13, %v1153_v43, 0.0 }
 0xaa5   : > { %v2591_v49 = vadd.f32 %v2590_v55, %v2589_v53  ;;  %v1157_v54 = vadd.f32 %v1156_v61, %v1155_v40  ;;  %v1033_v6 = vpop.xlane.xlu1 %1032  ;;  %v1047_v58 = vpop.xlane.xlu0 %1046 }
 0xaa6   : > { %v1048_v24 = vcvt.f32.s32 %v1047_v58  ;;  %v1034_v31 = vcvt.f32.s32 %v1033_v6 }
 0xaa7   : > { %v2592_v50 = vrot.slane %v2591_v49, 4  ;;  %v1158_v39 = vrot.slane %v1157_v54, 4 }
 0xaa8   : > { %v1051_v14 = vadd.s32 %v1050_v26, %v1048_v24  ;;  %v1037_v19 = vadd.s32 %v1036_v9, %v1034_v31 }
 0xaa9   : > { %v2593_v45 = vadd.f32 %v2592_v50, %v2591_v49  ;;  %v1159_v62 = vadd.f32 %v1158_v39, %v1157_v54  ;;  %v1062_v16 = vpop.xlane.xlu1 %1061 }
 0xaaa   : > { %v1063_v17 = vcvt.f32.s32 %v1062_v16  ;;  %vm1068_vm13 = vcmp.eq.s32.totalorder %v3892_v57, %v1051_v14  ;;  %vm1067_vm9 = vcmp.eq.s32.totalorder %v3892_v57, %v1037_v19 }
 0xaab   : > { %v1160_v8 = vrot.slane %v1159_v62, 2  ;;  %v2594_v0 = vrot.slane %v2593_v45, 2  ;;  %v2798_v30 = vsel %vm1067_vm9, 1.0, %v3663_v27  ;;  %v2799_v29 = vsel %vm1068_vm13, 1.0, %v3663_v27 }
 0xaac   : > { %v1066_v34 = vadd.s32 %v1065_v35, %v1063_v17 }
 0xaad   : > { %v1161_v56 = vadd.f32 %v1160_v8, %v1159_v62  ;;  %v2595_v13 = vadd.f32 %v2594_v0, %v2593_v45  ;;  %v3295_v38 = vpop.permute.xlu0 %3294  ;;  %v1101_v37 = vpop.permute.xlu1 %1100 }
 0xaae   : > { %vm1069_vm1 = vcmp.eq.s32.totalorder %v3892_v57, %v1066_v34  ;;  %v3297_v11 = vunpack.i.h.bf16 %v3295_v38  ;;  %v3296_v22 = vunpack.i.l.bf16 %v3295_v38  ;;  %v1117_v23 = vmul.f32 %v1101_v37, %v4083_v15 }
 0xaaf   : > { %v1162_v7 = vrot.slane %v1161_v56, 1  ;;  %v2596_v2 = vrot.slane %v2595_v13, 1  ;;  %v2800_v59 = vsel %vm1069_vm1, 1.0, %v3663_v27 }
 0xab0   : > { %v1104_v52 = vmul.f32 %v3297_v11, %v2799_v29  ;;  %v1116_v41 = vmul.f32 %v3297_v11, %v4078_v10  ;;  %v1103_v25 = vmul.f32 %v3296_v22, %v2798_v30  ;;  %v1115_v12 = vmul.f32 %v3296_v22, %v4075_v60 }
 0xab1   : > { %v1163_v1 = vadd.f32 %v1162_v7, %v1161_v56  ;;  %v2597_v21 = vadd.f32 %v2596_v2, %v2595_v13  ;;  %v1105_v44 = vmul.f32 %v2800_v59, %v1101_v37  ;;  %v1119_v46 = vsel %vm537_vm8, %v1117_v23, 0.0  ;;  %v2604_v40 = vpop.permute.xlu1 %2603 }
 0xab2   : > { %v1106_v32 = vadd.f32 %v1104_v52, %v1103_v25  ;;  %v1118_v57 = vadd.f32 %v1116_v41, %v1115_v12 }
 0xab3   : > { %2609 = vperm.xlu0 %3291, %v1163_v1   ;;  %v2600_v4 = vmul.f32 %v3433_v18, %v2597_v21  ;;  %v1107_v36 = vsel %vm537_vm8, %v1105_v44, 0.0 }
 0xab4   : > { %v1108_v42 = vadd.f32 %v1107_v36, %v1106_v32  ;;  %v1120_v47 = vadd.f32 %v1119_v46, %v1118_v57 }
 0xab5   : > { %2615 = vperm.xlu1 %3292, %v2600_v4  }
 0xab6   : > { %v1109_v27 = vrot.slane %v1108_v42, 4  ;;  %v1121_v28 = vrot.slane %v1120_v47, 4 }
 0xab8   : > { %v1110_v20 = vadd.f32 %v1109_v27, %v1108_v42  ;;  %v1122_v10 = vadd.f32 %v1121_v28, %v1120_v47 }
 0xaba   : > { %v1111_v63 = vrot.slane %v1110_v20, 2  ;;  %v1123_v48 = vrot.slane %v1122_v10, 2 }
 0xabc   : > { %v1112_v60 = vadd.f32 %v1111_v63, %v1110_v20  ;;  %v1124_v51 = vadd.f32 %v1123_v48, %v1122_v10 }
 0xabe   : > { %v1113_v43 = vrot.slane %v1112_v60, 1  ;;  %v1125_v15 = vrot.slane %v1124_v51, 1 }
 0xac0   : > { %v1114_v53 = vadd.f32 %v1113_v43, %v1112_v60  ;;  %v1126_v55 = vadd.f32 %v1125_v15, %v1124_v51 }
 0xac2   : > { %v2619_v61 = vsel %vm537_vm8, %v1114_v53, %v1126_v55 }
 0xac3   : > { %v2620_v49 = vsel %vm4354_vm10, %v2619_v61, %v2604_v40 }
 0xb2e   : > { %v2610_v54 = vpop.permute.xlu0 %2609 }
 0xb2f   : > { %v2621_v50 = vsel %vm1212_vm6, %v2620_v49, %v2610_v54 }
 0xb30   : > { %v2616_v39 = vpop.permute.xlu1 %2615 }
 0xb31   : > { %v2622_v45 = vsel %vm1203_vm14, %v2621_v50, %v2616_v39 }
 0xb32   : > { %v2623_v62 = vsel %vm378_vm3, %v2622_v45, 0.0 }
 0xb33   : > { %2624 = vst [vmem:[%s330_s20] sm:$0xff] %v2623_v62 }
 0xb34   : > { %3587 = shalt.err (!%p3584_p10)
}
 0xb35   : > { %s3588_s16 = scalar_lea.hbm %s4281_s8, 128  ;;  %s3592_s19 = scalar_lea.hbm %s4326_s7, 256 }
 0xb36   : > { %p3589_p3 = scmp.ne.s32.totalorder %s4281_s8, %s3588_s16  ;;  %p3593_p11 = scmp.lt.s32.totalorder %s4281_s8, %s4326_s7 }
 0xb37   : > { %p3594_p4 = scmp.lt.s32.totalorder %s3592_s19, %s3588_s16 }
 0xb38   : > { %p3590_p8 = pnand %p3589_p3, %p4355_p1 }
 0xb39   : > { %p3595_p7 = por %p3594_p4, %p3593_p11 }
 0xb3a   : > { %p3591_p2 = pneg %p3590_p8 }
 0xb3c   : > { %p3596_p12 = pnand %p3595_p7, %p3591_p2 }
 0xb3e   : > { %3599 = shalt.err (!%p3596_p12)
}
 0xb3f   : > { %3194 = dma.vmem_to_hbm [thread:$0]  (%p4355_p1), %s2640_s22, 128, %s4281_s8, %s2626_s24  }
 0xb40 PF: > { %s2651_s20 = sand.u32 1, %s3636_s27   ;;  %p4356_p9 = scmp.ne.s32.totalorder %s4334_s10, 0 }
 0xb41   : > { %p4357_p13 = scmp.ge.s32.totalorder %s3648_s30, 2  ;;  %s2652_s14 = scalar_lea.sflag [#allocation6], %s2651_s20 }
 0xb43   : > { %p3214_p6 = pnand %p4357_p13, %p4356_p9 }
 0xb45   : > { %p3215_p0 = pneg %p3214_p6 }
 0xb47   : > { %3631 = dma.done.wait (%p3215_p0), %s2652_s14, 128  }
 0xb48   : > { %3633 = vsyncadd (%p3215_p0), %s2652_s14, 4294967168  ;;  %p26_p5 = scmp.ge.s32.totalorder %s3800_s18, 4   ;;  %s4358_s27 = smov %s3640_s28 }
 0xb49   : > { %s4359_s28 = smov %s3644_s29  ;;  %s4360_s29 = smov %s3816_s23 }
 0xb4a   : > { %s4361_s30 = smov %s3800_s18  ;;  %28 = sbr.rel (!%p26_p5) target bundleno = 12 (0xc), region = 105 }
 0xb4f   :  { %2657 = vsyncpa [#allocation5], 1 }
 0xb50   :  { %2659 = vsyncpa [#allocation5 + $0x1], 1 }
 0xb51   :  { %2660 = vsyncpa [#allocation8], 1 }
 0xb52   :  { %2661 = vsyncpa [#allocation11], 1 }
 0xb53   :  { %2662 = vsyncpa [#allocation6], 1 }
 0xb54   :  { %2664 = vsyncpa [#allocation6 + $0x1], 1 }

</bundles_post_ra>
